<compile_context>
chip_gen: v6e
topology: v6e:2x2x1
jax: 0.10.0
libtpu: 0.0.40
codegen_flags: <defaults>
</compile_context>

<pallas_src>
import functools
import math

import jax
import jax.numpy as jnp
from jax import lax
from jax.experimental import pallas as pl
from jax.experimental.pallas import tpu as pltpu


def _layer_norm(x, gamma, beta, eps=1e-5):
    mu = jnp.mean(x, axis=-1, keepdims=True)
    var = jnp.mean((x - mu) ** 2, axis=-1, keepdims=True)
    return (x - mu) * lax.rsqrt(var + eps) * gamma + beta


def encoder_kernel(h_ref, wqkv_ref, wo_ref, w1_ref, w2_ref, b1_ref, vec_ref,
                   out_ref, *, seq_len, batch):
    bf16 = jnp.bfloat16
    M = seq_len * batch

    h = h_ref[...]                                   # (M, D) f32, batch-major rows
    D = h.shape[-1]
    hb = h.astype(bf16)
    scale = 1.0 / math.sqrt(D)                       # nhead=1 -> head_dim == d_model

    # Packed bias / LayerNorm vectors: one (16, D) f32 block, static row slices.
    vecs = vec_ref[...]
    bq, bk, bv = vecs[0:1], vecs[1:2], vecs[2:3]
    bo, b2 = vecs[3:4], vecs[4:5]
    g1, be1 = vecs[5:6], vecs[6:7]
    g2, be2 = vecs[7:8], vecs[8:9]
    gf, bef = vecs[9:10], vecs[10:11]

    # ---- attention (fused QKV projection, single masked (M, M) score matmul) ----
    qkv = jnp.dot(hb, wqkv_ref[...], preferred_element_type=jnp.float32)   # (M, 3D)
    q = qkv[:, 0:D] + bq
    k = qkv[:, D:2 * D] + bk
    v = qkv[:, 2 * D:3 * D] + bv

    scores = jnp.einsum('md,nd->mn', q.astype(bf16), k.astype(bf16),
                        preferred_element_type=jnp.float32) * scale
    # Batch-major layout (row = b*S + s): rows attend only to rows with the same s.
    row = lax.broadcasted_iota(jnp.int32, (M, M), 0)
    col = lax.broadcasted_iota(jnp.int32, (M, M), 1)
    same = (row % seq_len) == (col % seq_len)        # seq_len power of two -> cheap
    scores = jnp.where(same, scores, -1e30)          # keep mask math in f32

    m = jnp.max(scores, axis=-1, keepdims=True)
    e = jnp.exp(scores - m)
    denom = jnp.sum(e, axis=-1, keepdims=True)
    p = e * pl.reciprocal(denom, approx=True)

    attn = jnp.dot(p.astype(bf16), v.astype(bf16),
                   preferred_element_type=jnp.float32)
    attn = jnp.dot(attn.astype(bf16), wo_ref[...],
                   preferred_element_type=jnp.float32) + bo

    h1 = _layer_norm(h + attn, g1, be1)

    # ---- FFN: two full matmuls, all weights VMEM-resident ----
    h1b = h1.astype(bf16)
    ff = jnp.dot(h1b, w1_ref[...], preferred_element_type=jnp.float32) + b1_ref[...]
    ff = jnp.maximum(ff, 0.0)
    ff = jnp.dot(ff.astype(bf16), w2_ref[...],
                 preferred_element_type=jnp.float32) + b2

    h2 = _layer_norm(h1 + ff, g2, be2)
    hf = _layer_norm(h2, gf, bef)

    # ---- mean over seq: batch-major rows -> contiguous, 8-aligned blocks ----
    hf3 = hf.reshape(batch, seq_len, D)
    out_ref[...] = jnp.sum(hf3, axis=1) * (1.0 / seq_len)


def init_params(key, num_items, state_dim, d_model, ffn):
    ks = jax.random.split(key, 14)

    def n(k, shape, s):
        return (s * jax.random.normal(k, shape)).astype(jnp.float32)

    return {
        'embedding':     n(ks[0], (num_items, d_model), 1.0),
        'pos_embedding': n(ks[1], (state_dim, d_model), 1.0),
        'wq': n(ks[2], (d_model, d_model), 0.05),
        'wk': n(ks[3], (d_model, d_model), 0.05),
        'wv': n(ks[4], (d_model, d_model), 0.05),
        'bq': n(ks[5], (1, d_model), 0.02),
        'bk': n(ks[6], (1, d_model), 0.02),
        'bv': n(ks[7], (1, d_model), 0.02),
        'wo': n(ks[8], (d_model, d_model), 0.05),
        'bo': n(ks[9], (1, d_model), 0.02),
        'w1': n(ks[10], (d_model, ffn), 0.05),
        'b1': n(ks[11], (1, ffn), 0.02),
        'w2': n(ks[12], (ffn, d_model), 0.05),
        'b2': n(ks[13], (1, d_model), 0.02),
        'ln1_g': jnp.ones((1, d_model), jnp.float32),
        'ln1_b': jnp.zeros((1, d_model), jnp.float32),
        'ln2_g': jnp.ones((1, d_model), jnp.float32),
        'ln2_b': jnp.zeros((1, d_model), jnp.float32),
        'lnf_g': jnp.ones((1, d_model), jnp.float32),
        'lnf_b': jnp.zeros((1, d_model), jnp.float32),
    }


def pack_kernel_params(params):
    """One-time (outside the per-call path) bf16 cast, QKV fusion and bias packing."""
    bf16 = jnp.bfloat16
    D = params['wq'].shape[0]
    w_qkv = jnp.concatenate([params['wq'], params['wk'], params['wv']],
                            axis=1).astype(bf16)                      # (D, 3D)
    rows = jnp.concatenate(
        [params['bq'], params['bk'], params['bv'], params['bo'], params['b2'],
         params['ln1_g'], params['ln1_b'], params['ln2_g'], params['ln2_b'],
         params['lnf_g'], params['lnf_b']], axis=0).astype(jnp.float32)  # (11, D)
    vecs = jnp.zeros((16, D), jnp.float32).at[:rows.shape[0]].set(rows)
    return {
        'embedding': params['embedding'],
        'pos_embedding': params['pos_embedding'],
        'w_qkv': w_qkv,
        'wo': params['wo'].astype(bf16),
        'w1': params['w1'].astype(bf16),
        'w2': params['w2'].astype(bf16),
        'b1': params['b1'].astype(jnp.float32),
        'vecs': vecs,
    }


def transformer_dqn_forward(x_ids, len_state, kp):
    """x_ids: (B, S) int32 item ids; len_state is unused by forward (kept for parity).
    `kp` must be the output of pack_kernel_params (pre-cast / pre-packed weights)."""
    del len_state
    B, S = x_ids.shape
    D = kp['embedding'].shape[-1]
    FFN = kp['w1'].shape[-1]
    M = B * S

    # Embedding + positional gather is glue (plain JAX); batch-major (B, S, D) -> (M, D)
    # so every kernel matmul is a plain 2-D MXU matmul and the seq-mean is contiguous.
    emb = kp['embedding'][x_ids]                              # (B, S, D)
    pos = kp['pos_embedding'][jnp.arange(S)][None]            # (1, S, D)
    h = (emb + pos).astype(jnp.float32).reshape(M, D)

    flops = (2 * M * D * (3 * D)          # fused qkv projection
             + 2 * 2 * M * M * D          # scores + p@v
             + 2 * M * D * D              # out projection
             + 2 * 2 * M * D * FFN)       # FFN
    transcendentals = M * M + 4 * M
    bytes_accessed = (M * D * 4 + D * 3 * D * 2 + D * D * 2 + 2 * D * FFN * 2
                      + FFN * 4 + 16 * D * 4 + B * D * 4)

    kernel = functools.partial(encoder_kernel, seq_len=S, batch=B)
    vmem = pltpu.MemorySpace.VMEM

    return pl.pallas_call(
        kernel,
        out_shape=jax.ShapeDtypeStruct((B, D), jnp.float32),
        in_specs=[pl.BlockSpec(memory_space=vmem)] * 7,
        out_specs=pl.BlockSpec(memory_space=vmem),
        cost_estimate=pl.CostEstimate(flops=flops,
                                      transcendentals=transcendentals,
                                      bytes_accessed=bytes_accessed),
    )(h, kp['w_qkv'], kp['wo'], kp['w1'], kp['w2'], kp['b1'], kp['vecs'])


def reference_forward(x_ids, params):
    """Pure-JAX mirror of the PyTorch forward (eval mode), in (B, S, D) layout, with the
    same bf16 matmul-input casting as the kernel (f32 accumulation / elementwise)."""
    B, S = x_ids.shape
    emb = params['embedding'][x_ids]
    pos = params['pos_embedding'][jnp.arange(S)][None]
    h = (emb + pos).astype(jnp.float32)                     # (B, S, D)
    D = h.shape[-1]
    scale = 1.0 / math.sqrt(D)
    bf16 = jnp.bfloat16

    def mm(a, w):
        return jnp.dot(a.astype(bf16), w.astype(bf16),
                       preferred_element_type=jnp.float32)

    q = mm(h, params['wq']) + params['bq'][0]
    k = mm(h, params['wk']) + params['bk'][0]
    v = mm(h, params['wv']) + params['bv'][0]
    # PyTorch layer sees (L=B, N=S, E=D): attention mixes across the batch axis.
    scores = jnp.einsum('bsd,csd->sbc', q.astype(bf16), k.astype(bf16),
                        preferred_element_type=jnp.float32) * scale
    p = jax.nn.softmax(scores, axis=-1)
    attn = jnp.einsum('sbc,csd->bsd', p.astype(bf16), v.astype(bf16),
                      preferred_element_type=jnp.float32)
    attn = mm(attn, params['wo']) + params['bo'][0]

    def ln(x, g, b):
        mu = x.mean(-1, keepdims=True)
        var = ((x - mu) ** 2).mean(-1, keepdims=True)
        return (x - mu) / jnp.sqrt(var + 1e-5) * g[0] + b[0]

    h1 = ln(h + attn, params['ln1_g'], params['ln1_b'])
    ff = jnp.maximum(mm(h1, params['w1']) + params['b1'][0], 0.0)
    ff = mm(ff, params['w2']) + params['b2'][0]
    h2 = ln(h1 + ff, params['ln2_g'], params['ln2_b'])
    hf = ln(h2, params['lnf_g'], params['lnf_b'])
    return hf.mean(axis=1)                                  # (B, D)


if __name__ == "__main__":
    # Shapes implied by the module: x is (batch=4, seq=8) item ids; d_model =
    # dim_feedforward = 64; encoder-layer FFN hidden = 2048 (PyTorch default).
    B, S, D, FFN = 4, 8, 64, 2048
    NUM_ITEMS, STATE_DIM = 50, S

    key = jax.random.PRNGKey(0)
    kparam, kx = jax.random.split(key)
    params = init_params(kparam, NUM_ITEMS, STATE_DIM, D, FFN)
    kernel_params = pack_kernel_params(params)   # one-time cast / fusion / packing
    x_ids = jax.random.randint(kx, (B, S), 0, NUM_ITEMS, dtype=jnp.int32)
    len_state = jnp.full((B,), S, dtype=jnp.int32)  # unused by forward, kept for parity

    out = jax.block_until_ready(
        transformer_dqn_forward(x_ids, len_state, kernel_params))
    ref = jax.block_until_ready(reference_forward(x_ids, params))

    assert out.shape == (B, D), out.shape
    assert jnp.allclose(out, ref, atol=5e-3, rtol=5e-3), (
        "Pallas kernel output does not match JAX reference; max |diff| = "
        f"{float(jnp.max(jnp.abs(out - ref)))}")

    # TODO(synk): fc / fc2 heads (getAtion2 / getQ2) are not part of forward(); not ported.
    print("KERNEL_OK")
</pallas_src>

<mosaic_0001>
module attributes {stable_mosaic.version = 11 : i64} {
  func.func @encoder_kernel(%arg0: memref<32x64xf32, #tpu.memory_space<vmem>>, %arg1: memref<64x192xbf16, #tpu.memory_space<vmem>>, %arg2: memref<64x64xbf16, #tpu.memory_space<vmem>>, %arg3: memref<64x2048xbf16, #tpu.memory_space<vmem>>, %arg4: memref<2048x64xbf16, #tpu.memory_space<vmem>>, %arg5: memref<1x2048xf32, #tpu.memory_space<vmem>>, %arg6: memref<16x64xf32, #tpu.memory_space<vmem>>, %arg7: memref<4x64xf32, #tpu.memory_space<vmem>>) attributes {dimension_semantics = [], scalar_prefetch = 0 : i64, scratch_operands = 0 : i64, tpu.core_type = #tpu.core_type<tc>} {
    %c0 = arith.constant 0 : index
    %c0_0 = arith.constant 0 : index
    %0 = vector.load %arg0[%c0, %c0_0] : memref<32x64xf32, #tpu.memory_space<vmem>>, vector<32x64xf32>
    %1 = arith.truncf %0 : vector<32x64xf32> to vector<32x64xbf16>
    %c0_1 = arith.constant 0 : index
    %c0_2 = arith.constant 0 : index
    %2 = vector.load %arg6[%c0_1, %c0_2] : memref<16x64xf32, #tpu.memory_space<vmem>>, vector<16x64xf32>
    %3 = vector.extract_strided_slice %2 {offsets = [0, 0], sizes = [1, 64], strides = [1, 1]} : vector<16x64xf32> to vector<1x64xf32>
    %4 = vector.extract_strided_slice %2 {offsets = [1, 0], sizes = [1, 64], strides = [1, 1]} : vector<16x64xf32> to vector<1x64xf32>
    %5 = vector.extract_strided_slice %2 {offsets = [2, 0], sizes = [1, 64], strides = [1, 1]} : vector<16x64xf32> to vector<1x64xf32>
    %6 = vector.extract_strided_slice %2 {offsets = [3, 0], sizes = [1, 64], strides = [1, 1]} : vector<16x64xf32> to vector<1x64xf32>
    %7 = vector.extract_strided_slice %2 {offsets = [4, 0], sizes = [1, 64], strides = [1, 1]} : vector<16x64xf32> to vector<1x64xf32>
    %8 = vector.extract_strided_slice %2 {offsets = [5, 0], sizes = [1, 64], strides = [1, 1]} : vector<16x64xf32> to vector<1x64xf32>
    %9 = vector.extract_strided_slice %2 {offsets = [6, 0], sizes = [1, 64], strides = [1, 1]} : vector<16x64xf32> to vector<1x64xf32>
    %10 = vector.extract_strided_slice %2 {offsets = [7, 0], sizes = [1, 64], strides = [1, 1]} : vector<16x64xf32> to vector<1x64xf32>
    %11 = vector.extract_strided_slice %2 {offsets = [8, 0], sizes = [1, 64], strides = [1, 1]} : vector<16x64xf32> to vector<1x64xf32>
    %12 = vector.extract_strided_slice %2 {offsets = [9, 0], sizes = [1, 64], strides = [1, 1]} : vector<16x64xf32> to vector<1x64xf32>
    %13 = vector.extract_strided_slice %2 {offsets = [10, 0], sizes = [1, 64], strides = [1, 1]} : vector<16x64xf32> to vector<1x64xf32>
    %c0_3 = arith.constant 0 : index
    %c0_4 = arith.constant 0 : index
    %14 = vector.load %arg1[%c0_3, %c0_4] : memref<64x192xbf16, #tpu.memory_space<vmem>>, vector<64x192xbf16>
    %cst = arith.constant dense<0.000000e+00> : vector<32x192xf32>
    %15 = tpu.matmul %1, %14, %cst {dimension_numbers = #tpu.dot_dimension_numbers<[1], [0], [0], [1], [0, 0, 1, 1], [], []>} : vector<32x64xbf16>, vector<64x192xbf16>, vector<32x192xf32> -> vector<32x192xf32>
    %16 = vector.extract_strided_slice %15 {offsets = [0, 0], sizes = [32, 64], strides = [1, 1]} : vector<32x192xf32> to vector<32x64xf32>
    %17 = vector.broadcast %3 : vector<1x64xf32> to vector<32x64xf32>
    %18 = arith.addf %16, %17 : vector<32x64xf32>
    %19 = vector.extract_strided_slice %15 {offsets = [0, 64], sizes = [32, 64], strides = [1, 1]} : vector<32x192xf32> to vector<32x64xf32>
    %20 = vector.broadcast %4 : vector<1x64xf32> to vector<32x64xf32>
    %21 = arith.addf %19, %20 : vector<32x64xf32>
    %22 = vector.extract_strided_slice %15 {offsets = [0, 128], sizes = [32, 64], strides = [1, 1]} : vector<32x192xf32> to vector<32x64xf32>
    %23 = vector.broadcast %5 : vector<1x64xf32> to vector<32x64xf32>
    %24 = arith.addf %22, %23 : vector<32x64xf32>
    %25 = arith.truncf %18 : vector<32x64xf32> to vector<32x64xbf16>
    %26 = arith.truncf %21 : vector<32x64xf32> to vector<32x64xbf16>
    "tpu.trace_start"() <{level = 10 : i32, message = "md,nd->mn"}> : () -> ()
    %cst_5 = arith.constant dense<0.000000e+00> : vector<32x32xf32>
    %27 = tpu.matmul %25, %26, %cst_5 {dimension_numbers = #tpu.dot_dimension_numbers<[1], [1], [0], [0], [0, 0, 1, 0], [], []>} : vector<32x64xbf16>, vector<32x64xbf16>, vector<32x32xf32> -> vector<32x32xf32>
    "tpu.trace_stop"() : () -> ()
    %cst_6 = arith.constant 1.250000e-01 : f32
    %28 = vector.broadcast %cst_6 : f32 to vector<32x32xf32>
    %29 = arith.mulf %27, %28 : vector<32x32xf32>
    %30 = tpu.iota {dimensions = array<i32: 0>} : vector<32x32xi32>
    %31 = tpu.iota {dimensions = array<i32: 1>} : vector<32x32xi32>
    %c8_i32 = arith.constant 8 : i32
    %c0_i32 = arith.constant 0 : i32
    %32 = arith.cmpi eq, %c8_i32, %c0_i32 : i32
    %c1_i32 = arith.constant 1 : i32
    %33 = arith.select %32, %c1_i32, %c8_i32 : i32
    %34 = vector.broadcast %33 : i32 to vector<32x32xi32>
    %35 = arith.remsi %30, %34 : vector<32x32xi32>
    %c0_i32_7 = arith.constant 0 : i32
    %36 = vector.broadcast %c0_i32_7 : i32 to vector<32x32xi32>
    %37 = arith.cmpi ne, %35, %36 : vector<32x32xi32>
    %c0_i32_8 = arith.constant 0 : i32
    %38 = vector.broadcast %c0_i32_8 : i32 to vector<32x32xi32>
    %39 = arith.cmpi slt, %35, %38 : vector<32x32xi32>
    %c0_i32_9 = arith.constant 0 : i32
    %40 = arith.cmpi slt, %33, %c0_i32_9 : i32
    %41 = vector.broadcast %40 : i1 to vector<32x32xi1>
    %42 = vector.broadcast %41 : vector<32x32xi1> to vector<32x32xi1>
    %43 = arith.xori %39, %42 : vector<32x32xi1>
    %44 = arith.andi %43, %37 : vector<32x32xi1>
    %45 = vector.broadcast %33 : i32 to vector<32x32xi32>
    %46 = arith.addi %35, %45 : vector<32x32xi32>
    %47 = arith.select %44, %46, %35 : vector<32x32xi1>, vector<32x32xi32>
    %c8_i32_10 = arith.constant 8 : i32
    %c0_i32_11 = arith.constant 0 : i32
    %48 = arith.cmpi eq, %c8_i32_10, %c0_i32_11 : i32
    %c1_i32_12 = arith.constant 1 : i32
    %49 = arith.select %48, %c1_i32_12, %c8_i32_10 : i32
    %50 = vector.broadcast %49 : i32 to vector<32x32xi32>
    %51 = arith.remsi %31, %50 : vector<32x32xi32>
    %c0_i32_13 = arith.constant 0 : i32
    %52 = vector.broadcast %c0_i32_13 : i32 to vector<32x32xi32>
    %53 = arith.cmpi ne, %51, %52 : vector<32x32xi32>
    %c0_i32_14 = arith.constant 0 : i32
    %54 = vector.broadcast %c0_i32_14 : i32 to vector<32x32xi32>
    %55 = arith.cmpi slt, %51, %54 : vector<32x32xi32>
    %c0_i32_15 = arith.constant 0 : i32
    %56 = arith.cmpi slt, %49, %c0_i32_15 : i32
    %57 = vector.broadcast %56 : i1 to vector<32x32xi1>
    %58 = vector.broadcast %57 : vector<32x32xi1> to vector<32x32xi1>
    %59 = arith.xori %55, %58 : vector<32x32xi1>
    %60 = arith.andi %59, %53 : vector<32x32xi1>
    %61 = vector.broadcast %49 : i32 to vector<32x32xi32>
    %62 = arith.addi %51, %61 : vector<32x32xi32>
    %63 = arith.select %60, %62, %51 : vector<32x32xi1>, vector<32x32xi32>
    %64 = arith.cmpi eq, %47, %63 : vector<32x32xi32>
    %cst_16 = arith.constant -1.000000e+30 : f32
    %65 = vector.broadcast %cst_16 : f32 to vector<32x32xf32>
    %66 = arith.select %64, %29, %65 : vector<32x32xi1>, vector<32x32xf32>
    %cst_17 = arith.constant dense<0xFF800000> : vector<32xf32>
    %67 = vector.multi_reduction <maximumf>, %66, %cst_17 [1] : vector<32x32xf32> to vector<32xf32>
    %68 = vector.shape_cast %67 : vector<32xf32> to vector<32x1xf32>
    %69 = vector.broadcast %68 : vector<32x1xf32> to vector<32x32xf32>
    %70 = arith.subf %66, %69 : vector<32x32xf32>
    %71 = math.exp %70 : vector<32x32xf32>
    %cst_18 = arith.constant dense<0.000000e+00> : vector<32xf32>
    %72 = vector.multi_reduction <add>, %71, %cst_18 [1] : vector<32x32xf32> to vector<32xf32>
    %73 = vector.shape_cast %72 : vector<32xf32> to vector<32x1xf32>
    %74 = tpu.reciprocal %73 {approx = true} : vector<32x1xf32> -> vector<32x1xf32>
    %75 = vector.broadcast %74 : vector<32x1xf32> to vector<32x32xf32>
    %76 = arith.mulf %71, %75 : vector<32x32xf32>
    %77 = arith.truncf %76 : vector<32x32xf32> to vector<32x32xbf16>
    %78 = arith.truncf %24 : vector<32x64xf32> to vector<32x64xbf16>
    %cst_19 = arith.constant dense<0.000000e+00> : vector<32x64xf32>
    %79 = tpu.matmul %77, %78, %cst_19 {dimension_numbers = #tpu.dot_dimension_numbers<[1], [0], [0], [1], [0, 0, 1, 1], [], []>} : vector<32x32xbf16>, vector<32x64xbf16>, vector<32x64xf32> -> vector<32x64xf32>
    %80 = arith.truncf %79 : vector<32x64xf32> to vector<32x64xbf16>
    %c0_20 = arith.constant 0 : index
    %c0_21 = arith.constant 0 : index
    %81 = vector.load %arg2[%c0_20, %c0_21] : memref<64x64xbf16, #tpu.memory_space<vmem>>, vector<64x64xbf16>
    %cst_22 = arith.constant dense<0.000000e+00> : vector<32x64xf32>
    %82 = tpu.matmul %80, %81, %cst_22 {dimension_numbers = #tpu.dot_dimension_numbers<[1], [0], [0], [1], [0, 0, 1, 1], [], []>} : vector<32x64xbf16>, vector<64x64xbf16>, vector<32x64xf32> -> vector<32x64xf32>
    %83 = vector.broadcast %6 : vector<1x64xf32> to vector<32x64xf32>
    %84 = arith.addf %82, %83 : vector<32x64xf32>
    %85 = arith.addf %0, %84 : vector<32x64xf32>
    %cst_23 = arith.constant dense<0.000000e+00> : vector<32xf32>
    %86 = vector.multi_reduction <add>, %85, %cst_23 [1] : vector<32x64xf32> to vector<32xf32>
    %87 = vector.shape_cast %86 : vector<32xf32> to vector<32x1xf32>
    %cst_24 = arith.constant 6.400000e+01 : f32
    %88 = vector.broadcast %cst_24 : f32 to vector<32x1xf32>
    %89 = arith.divf %87, %88 : vector<32x1xf32>
    %90 = vector.broadcast %89 : vector<32x1xf32> to vector<32x64xf32>
    %91 = arith.subf %85, %90 : vector<32x64xf32>
    %92 = arith.mulf %91, %91 : vector<32x64xf32>
    %cst_25 = arith.constant dense<0.000000e+00> : vector<32xf32>
    %93 = vector.multi_reduction <add>, %92, %cst_25 [1] : vector<32x64xf32> to vector<32xf32>
    %94 = vector.shape_cast %93 : vector<32xf32> to vector<32x1xf32>
    %cst_26 = arith.constant 6.400000e+01 : f32
    %95 = vector.broadcast %cst_26 : f32 to vector<32x1xf32>
    %96 = arith.divf %94, %95 : vector<32x1xf32>
    %97 = vector.broadcast %89 : vector<32x1xf32> to vector<32x64xf32>
    %98 = arith.subf %85, %97 : vector<32x64xf32>
    %cst_27 = arith.constant 9.99999974E-6 : f32
    %99 = vector.broadcast %cst_27 : f32 to vector<32x1xf32>
    %100 = arith.addf %96, %99 : vector<32x1xf32>
    %101 = math.rsqrt %100 : vector<32x1xf32>
    %102 = vector.broadcast %101 : vector<32x1xf32> to vector<32x64xf32>
    %103 = arith.mulf %98, %102 : vector<32x64xf32>
    %104 = vector.broadcast %8 : vector<1x64xf32> to vector<32x64xf32>
    %105 = arith.mulf %103, %104 : vector<32x64xf32>
    %106 = vector.broadcast %9 : vector<1x64xf32> to vector<32x64xf32>
    %107 = arith.addf %105, %106 : vector<32x64xf32>
    %108 = arith.truncf %107 : vector<32x64xf32> to vector<32x64xbf16>
    %c0_28 = arith.constant 0 : index
    %c0_29 = arith.constant 0 : index
    %109 = vector.load %arg3[%c0_28, %c0_29] : memref<64x2048xbf16, #tpu.memory_space<vmem>>, vector<64x2048xbf16>
    %cst_30 = arith.constant dense<0.000000e+00> : vector<32x2048xf32>
    %110 = tpu.matmul %108, %109, %cst_30 {dimension_numbers = #tpu.dot_dimension_numbers<[1], [0], [0], [1], [0, 0, 1, 1], [], []>} : vector<32x64xbf16>, vector<64x2048xbf16>, vector<32x2048xf32> -> vector<32x2048xf32>
    %c0_31 = arith.constant 0 : index
    %c0_32 = arith.constant 0 : index
    %111 = vector.load %arg5[%c0_31, %c0_32] : memref<1x2048xf32, #tpu.memory_space<vmem>>, vector<1x2048xf32>
    %112 = vector.broadcast %111 : vector<1x2048xf32> to vector<32x2048xf32>
    %113 = arith.addf %110, %112 : vector<32x2048xf32>
    %cst_33 = arith.constant 0.000000e+00 : f32
    %114 = vector.broadcast %cst_33 : f32 to vector<32x2048xf32>
    %115 = arith.maximumf %113, %114 : vector<32x2048xf32>
    %116 = arith.truncf %115 : vector<32x2048xf32> to vector<32x2048xbf16>
    %c0_34 = arith.constant 0 : index
    %c0_35 = arith.constant 0 : index
    %117 = vector.load %arg4[%c0_34, %c0_35] : memref<2048x64xbf16, #tpu.memory_space<vmem>>, vector<2048x64xbf16>
    %cst_36 = arith.constant dense<0.000000e+00> : vector<32x64xf32>
    %118 = tpu.matmul %116, %117, %cst_36 {dimension_numbers = #tpu.dot_dimension_numbers<[1], [0], [0], [1], [0, 0, 1, 1], [], []>} : vector<32x2048xbf16>, vector<2048x64xbf16>, vector<32x64xf32> -> vector<32x64xf32>
    %119 = vector.broadcast %7 : vector<1x64xf32> to vector<32x64xf32>
    %120 = arith.addf %118, %119 : vector<32x64xf32>
    %121 = arith.addf %107, %120 : vector<32x64xf32>
    %cst_37 = arith.constant dense<0.000000e+00> : vector<32xf32>
    %122 = vector.multi_reduction <add>, %121, %cst_37 [1] : vector<32x64xf32> to vector<32xf32>
    %123 = vector.shape_cast %122 : vector<32xf32> to vector<32x1xf32>
    %cst_38 = arith.constant 6.400000e+01 : f32
    %124 = vector.broadcast %cst_38 : f32 to vector<32x1xf32>
    %125 = arith.divf %123, %124 : vector<32x1xf32>
    %126 = vector.broadcast %125 : vector<32x1xf32> to vector<32x64xf32>
    %127 = arith.subf %121, %126 : vector<32x64xf32>
    %128 = arith.mulf %127, %127 : vector<32x64xf32>
    %cst_39 = arith.constant dense<0.000000e+00> : vector<32xf32>
    %129 = vector.multi_reduction <add>, %128, %cst_39 [1] : vector<32x64xf32> to vector<32xf32>
    %130 = vector.shape_cast %129 : vector<32xf32> to vector<32x1xf32>
    %cst_40 = arith.constant 6.400000e+01 : f32
    %131 = vector.broadcast %cst_40 : f32 to vector<32x1xf32>
    %132 = arith.divf %130, %131 : vector<32x1xf32>
    %133 = vector.broadcast %125 : vector<32x1xf32> to vector<32x64xf32>
    %134 = arith.subf %121, %133 : vector<32x64xf32>
    %cst_41 = arith.constant 9.99999974E-6 : f32
    %135 = vector.broadcast %cst_41 : f32 to vector<32x1xf32>
    %136 = arith.addf %132, %135 : vector<32x1xf32>
    %137 = math.rsqrt %136 : vector<32x1xf32>
    %138 = vector.broadcast %137 : vector<32x1xf32> to vector<32x64xf32>
    %139 = arith.mulf %134, %138 : vector<32x64xf32>
    %140 = vector.broadcast %10 : vector<1x64xf32> to vector<32x64xf32>
    %141 = arith.mulf %139, %140 : vector<32x64xf32>
    %142 = vector.broadcast %11 : vector<1x64xf32> to vector<32x64xf32>
    %143 = arith.addf %141, %142 : vector<32x64xf32>
    %cst_42 = arith.constant dense<0.000000e+00> : vector<32xf32>
    %144 = vector.multi_reduction <add>, %143, %cst_42 [1] : vector<32x64xf32> to vector<32xf32>
    %145 = vector.shape_cast %144 : vector<32xf32> to vector<32x1xf32>
    %cst_43 = arith.constant 6.400000e+01 : f32
    %146 = vector.broadcast %cst_43 : f32 to vector<32x1xf32>
    %147 = arith.divf %145, %146 : vector<32x1xf32>
    %148 = vector.broadcast %147 : vector<32x1xf32> to vector<32x64xf32>
    %149 = arith.subf %143, %148 : vector<32x64xf32>
    %150 = arith.mulf %149, %149 : vector<32x64xf32>
    %cst_44 = arith.constant dense<0.000000e+00> : vector<32xf32>
    %151 = vector.multi_reduction <add>, %150, %cst_44 [1] : vector<32x64xf32> to vector<32xf32>
    %152 = vector.shape_cast %151 : vector<32xf32> to vector<32x1xf32>
    %cst_45 = arith.constant 6.400000e+01 : f32
    %153 = vector.broadcast %cst_45 : f32 to vector<32x1xf32>
    %154 = arith.divf %152, %153 : vector<32x1xf32>
    %155 = vector.broadcast %147 : vector<32x1xf32> to vector<32x64xf32>
    %156 = arith.subf %143, %155 : vector<32x64xf32>
    %cst_46 = arith.constant 9.99999974E-6 : f32
    %157 = vector.broadcast %cst_46 : f32 to vector<32x1xf32>
    %158 = arith.addf %154, %157 : vector<32x1xf32>
    %159 = math.rsqrt %158 : vector<32x1xf32>
    %160 = vector.broadcast %159 : vector<32x1xf32> to vector<32x64xf32>
    %161 = arith.mulf %156, %160 : vector<32x64xf32>
    %162 = vector.broadcast %12 : vector<1x64xf32> to vector<32x64xf32>
    %163 = arith.mulf %161, %162 : vector<32x64xf32>
    %164 = vector.broadcast %13 : vector<1x64xf32> to vector<32x64xf32>
    %165 = arith.addf %163, %164 : vector<32x64xf32>
    %166 = vector.shape_cast %165 : vector<32x64xf32> to vector<4x8x64xf32>
    %cst_47 = arith.constant dense<0.000000e+00> : vector<4x64xf32>
    %167 = vector.multi_reduction <add>, %166, %cst_47 [1] : vector<4x8x64xf32> to vector<4x64xf32>
    %cst_48 = arith.constant 1.250000e-01 : f32
    %168 = vector.broadcast %cst_48 : f32 to vector<4x64xf32>
    %169 = arith.mulf %167, %168 : vector<4x64xf32>
    %c0_49 = arith.constant 0 : index
    %c0_50 = arith.constant 0 : index
    %170 = vector.load %arg7[%c0_49, %c0_50] : memref<4x64xf32, #tpu.memory_space<vmem>>, vector<4x64xf32>
    tpu.vector_store %arg7[%c0_49, %c0_50], %169 {strides = array<i32>} : memref<4x64xf32, #tpu.memory_space<vmem>>, vector<4x64xf32>,
    return
  }
}

</mosaic_0001>

<bundles_post_ra>
// kernel: tpu_custom_call.1
= control target key start
LH: loop header
LB: loop body
LE: loop exit
PB: predicated region body
PF: predicated region fallthrough
CT: control target
= control target key end

     0   :  { %v144_v1 = vlaneseq  ;;  %v3914_v3 = vmov 0   ;;  %vm84_vm0 = vcmask 523264   ;;  %s3915_s23 = smov 64   ;;  %s4973_s0 = inlined_call_operand.vmem [shape: f32[32,64], index: 0, kind: input, shape index: {}]   ;;  %s4974_s1 = inlined_call_operand.vmem [shape: bf16[64,192], index: 1, kind: input, shape index: {}]   ;;  %s4975_s2 = inlined_call_operand.vmem [shape: bf16[64,64], index: 2, kind: input, shape index: {}]   ;;  %s4976_s3 = inlined_call_operand.vmem [shape: bf16[64,2048], index: 3, kind: input, shape index: {}]   ;;  %s4977_s4 = inlined_call_operand.vmem [shape: bf16[2048,64], index: 4, kind: input, shape index: {}]   ;;  %s4978_s5 = inlined_call_operand.vmem [shape: f32[1,2048], index: 5, kind: input, shape index: {}]   ;;  %s4979_s6 = inlined_call_operand.vmem [shape: f32[16,64], index: 6, kind: input, shape index: {}]   ;;  %s4980_s7 = inlined_call_operand.hbm [shape: f32[4,64], index: 7, kind: output, shape index: {}]  }
   0x1   :  { %v3706_v0 = vld [vmem:[%s4974_s1 + $0x34] ss:$8 sps:$4 sm:$0xff]   ;;  %v3708_v2 = vld [vmem:[%s4974_s1 + $0x30] ss:$8 sps:$4 sm:$0xff]   ;;  %123 = vmatprep.mubr.bf16.mxu0 %v3914_v3  ;;  %v3709_v4 = vld [vmem:[%s4974_s1 + $0x24] ss:$8 sps:$4 sm:$0xff]  }
   0x2   :  { %99 = vmatprep.subr.bf16.mxu0 %v3706_v0  ;;  %v3968_v5 = vshrl.u32 %v144_v1, 7  ;;  %v3711_v6 = vld [vmem:[%s4974_s1 + $0x20] ss:$8 sps:$4 sm:$0xff]   ;;  %v3712_v7 = vld [vmem:[%s4974_s1 + $0x14] ss:$8 sps:$4 sm:$0xff]  }
   0x3   :  { %100 = vmatpush1.bf16.msra.mxu0 %v3708_v2  ;;  %v3714_v9 = vld [vmem:[%s4974_s1 + $0x10] ss:$8 sps:$4 sm:$0xff]   ;;  %v3715_v10 = vld [vmem:[%s4974_s1 + $0x4] ss:$8 sps:$4 sm:$0xff]   ;;  %v3717_v13 = vld [vmem:[%s4974_s1] ss:$8 sps:$4 sm:$0xff]  }
   0x4   :  { %101 = vmatprep.subr.bf16.mxu0 %v3709_v4  ;;  %v3977_v8 = vsub.s32 1, %v3968_v5  ;;  %v3988_v11 = vld [vmem:[%s4979_s6] sm:$0xff]  ;;  %v4003_v15 = vld [vmem:[%s4973_s0 + $0x8] sm:$0xff]  ;;  %v4011_v17 = vld [vmem:[%s4973_s0 + $0x10] sm:$0xff] }
   0x5   :  { %v3998_v14 = vld [vmem:[%s4973_s0] sm:$0xff]  ;;  %v4016_v18 = vld [vmem:[%s4973_s0 + $0x18] sm:$0xff] }
   0x6   :  { %4987 = vst [vmem:[#allocation5_spill] sm:$0xff] %v3977_v8  ;;  %v155_v12 = vrot.slane %v3988_v11, %v3977_v8  ;;  %v32_v16 = vpack.c.bf16 %v4003_v15, %v3998_v14  ;;  %v33_v19 = vpack.c.bf16 %v4016_v18, %v4011_v17 }
   0x7   :  { %102 = vmatpush1.bf16.msra.mxu0 %v3711_v6 }
   0x8   :  { %103 = vmatprep.subr.bf16.mxu0 %v3712_v7  ;;  %157 = vrot.lane.b32.xlu0 %v155_v12, %s3915_s23 }
   0xb   :  { %104 = vmatpush1.bf16.msra.mxu0 %v3714_v9 }
   0xc   :  { %105 = vmatprep.subr.bf16.mxu0 %v3715_v10 }
   0xf   :  { %106 = vmatpush1.bf16.msra.mxu0 %v3717_v13 }
  0x12   :  { %3215 = vmatmul.mubr.msk.bf16.vlgmr.msra.gmra.mxu0 %vm84_vm0, %v32_v16 }
  0x13   :  { %133 = vmatprep.mubr.bf16.mxu0 %v3914_v3 }
  0x1a   :  { %3216 = vmatmul.mubr.msk.bf16.gmra.mxu0 %vm84_vm0, %v33_v19 }
  0x1b   :  { %12 = vsyncpa [#allocation3], 0  ;;  %v4024_v20 = vsub.s32 0, %v3968_v5  ;;  %v4027_v21 = vsub.s32 2, %v3968_v5  ;;  %v253_v55 = vand.u32 127, %v144_v1  ;;  %v251_v56 = vadd.s32 24, %v3968_v5 }
  0x1c   :  { %v258_v57 = vand.u32 7, %v3968_v5  ;;  %v249_v58 = vadd.s32 8, %v3968_v5  ;;  %v250_v62 = vadd.s32 16, %v3968_v5  ;;  %vm322_vm3 = vcmask 261120  }
  0x1d   :  { %4988 = vst [vmem:[#allocation6_spill] sm:$0xff] %v4024_v20  ;;  %4989 = vst [vmem:[#allocation7_spill] sm:$0xff] %v4027_v21  ;;  %v147_v23 = vrot.slane %v3988_v11, %v4024_v20  ;;  %v167_v26 = vrot.slane %v3988_v11, %v4027_v21  ;;  %v306_v60 = vand.u32 7, %v253_v55  ;;  %v279_v61 = vand.u32 7, %v251_v56 }
  0x1e   :  { %v265_v0 = vand.u32 7, %v249_v58  ;;  %v272_v6 = vand.u32 7, %v250_v62  ;;  %v3720_v62 = vld [vmem:[%s4975_s2 + $0x8] sm:$0xff]   ;;  %vm3184_vm6 = vcmask 1041409   ;;  %vm3186_vm7 = vcmask 1042434  }
  0x1f   :  { %vm314_vm1 = vcmp.eq.s32.totalorder %v258_v57, %v306_v60  ;;  %vm317_vm2 = vcmp.eq.s32.totalorder %v279_v61, %v306_v60  ;;  %vm3188_vm8 = vcmask 1043459   ;;  %vm3191_vm9 = vcmask 519168  }
  0x20   :  { %vm315_vm4 = vcmp.eq.s32.totalorder %v265_v0, %v306_v60  ;;  %vm316_vm5 = vcmp.eq.s32.totalorder %v272_v6, %v306_v60 }
  0x7a   :  { %v158_v24 = vpop.permute.xlu0 %157 }
  0xd2   :  { %v125_v22 = vpop.f32.mrf.mxu0 }
  0xd3   :  { %v148_v28 = vadd.f32 %v147_v23, %v125_v22  ;;  %v160_v29 = vadd.f32 %v158_v24, %v125_v22 }
  0xd4   :  { %v127_v25 = vpop.f32.mrf.mxu0 }
  0xd5   :  { %v168_v33 = vadd.f32 %v167_v26, %v127_v25 }
  0xd6   :  { %v129_v27 = vpop.f32.mrf.mxu0 }
  0xd7   :  { %v149_v30 = vadd.f32 %v147_v23, %v129_v27  ;;  %v161_v31 = vadd.f32 %v158_v24, %v129_v27 }
  0xd8   :  { %v131_v32 = vpop.f32.mrf.mxu0 }
  0xd9   :  { %v169_v34 = vadd.f32 %v167_v26, %v131_v32  ;;  %v174_v35 = vpack.c.bf16 %v161_v31, %v160_v29  ;;  %v172_v36 = vpack.c.bf16 %v149_v30, %v148_v28 }
  0xda   :  { %v135_v37 = vpop.f32.mrf.mxu0 }
  0xdb   :  { %v369_v38 = vpack.c.bf16 %v169_v34, %v168_v33  ;;  %v150_v39 = vadd.f32 %v147_v23, %v135_v37  ;;  %178 = vrot.lane.b32.xlu1 %v174_v35, %s3915_s23  ;;  %3677 = vmatprep.mubr.msk.bf16.mxu1 %vm84_vm0, %v172_v36  ;;  %v162_v42 = vadd.f32 %v158_v24, %v135_v37 }
  0xdc   :  { %v137_v40 = vpop.f32.mrf.mxu0 }
  0xdd   :  { %v170_v52 = vadd.f32 %v167_v26, %v137_v40 }
  0xde   :  { %v139_v41 = vpop.f32.mrf.mxu0 }
  0xdf   :  { %v151_v43 = vadd.f32 %v147_v23, %v139_v41  ;;  %v163_v44 = vadd.f32 %v158_v24, %v139_v41 }
  0xe0   :  { %v141_v49 = vpop.f32.mrf.mxu0 }
  0xe1   :  { %v173_v45 = vpack.c.bf16 %v151_v43, %v150_v39  ;;  %v175_v46 = vpack.c.bf16 %v163_v44, %v162_v42  ;;  %v171_v51 = vadd.f32 %v167_v26, %v141_v49 }
  0xe3   :  { %180 = vrot.lane.b32.xlu0 %v175_v46, %s3915_s23  ;;  %v370_v53 = vpack.c.bf16 %v171_v51, %v170_v52  ;;  %v3718_v46 = vld [vmem:[%s4975_s2 + $0x18] sm:$0xff]  }
  0xe4   :  { %3689 = vmatprep.subr.bf16.mxu0 %v3718_v46 }
  0xe5   :  { %3690 = vmatpush3.bf16.msra.mxu0 %v3718_v46 }
 0x14d   :  { %v179_v50 = vpop.permute.xlu1 %178 }
 0x14e   :  { %v189_v54 = vsel %vm84_vm0, %v179_v50, 0 }
 0x155   :  { %v181_v47 = vpop.permute.xlu0 %180 }
 0x156   :  { %3701 = vmatprep.subr.msk.bf16.mxu1 %vm84_vm0, %v181_v47  ;;  %v192_v48 = vsel %vm84_vm0, %v181_v47, 0  ;;  %v3719_v47 = vld [vmem:[%s4975_s2 + $0x10] sm:$0xff]  }
 0x157   :  { %3674 = vmatpush3.bf16.xpose.msra.mxu1 %v192_v48  ;;  %3691 = vmatprep.subr.bf16.mxu0 %v3719_v47 }
 0x158   :  { %3702 = vmatprep.subr.msk.bf16.mxu1 %vm84_vm0, %v179_v50  ;;  %3692 = vmatpush3.bf16.msra.mxu0 %v3719_v47 }
 0x159   :  { %3693 = vmatprep.subr.bf16.mxu0 %v3720_v62 }
 0x15c   :  { %3694 = vmatpush3.bf16.msra.mxu0 %v3720_v62 }
 0x15f   :  { %3676 = vmatpush3.bf16.xpose.msra.mxu1 %v189_v54 }
 0x160   :  { %3681 = vmatprep.subr.bf16.mxu1 %v370_v53 }
 0x166   :  { %3678 = vmatmul.mubr.msk.bf16.vlgmr.msra.gmra.mxu1 %vm84_vm0, %v173_v45 }
 0x167   :  { %3682 = vmatpush3.bf16.msra.mxu1 %v370_v53 }
 0x168   :  { %3683 = vmatprep.subr.bf16.mxu1 %v369_v38 }
 0x16b   :  { %3684 = vmatpush3.bf16.msra.mxu1 %v369_v38 }
 0x226   :  { %v3679_v59 = vpop.f32.mrf.mxu1 }
 0x227   :  { %v245_v12 = vmul.f32 0.125, %v3679_v59 }
 0x228   :  { %v228_v63 = vpop.f32.mrf.mxu1 }
 0x229   :  { %v243_v2 = vmul.f32 0.125, %v228_v63  ;;  %v320_v24 = vsel %vm316_vm5, %v245_v12, -1e+30  ;;  %v3721_v63 = vld [vmem:[%s4975_s2] sm:$0xff]  }
 0x22a   :  { %v3680_v4 = vpop.f32.mrf.mxu1  ;;  %v329_v25 = vsel %vm322_vm3, %v320_v24, -inf  ;;  %3695 = vmatprep.subr.bf16.mxu0 %v3721_v63 }
 0x22b   :  { %v246_v7 = vmul.f32 0.125, %v3680_v4  ;;  %v318_v1 = vsel %vm314_vm1, %v243_v2, -1e+30  ;;  %3696 = vmatpush3.bf16.msra.mxu0 %v3721_v63 }
 0x22c   :  { %v231_v9 = vpop.f32.mrf.mxu1  ;;  %v323_v10 = vsel %vm322_vm3, %v318_v1, -inf }
 0x22d   :  { %v244_v13 = vmul.f32 0.125, %v231_v9  ;;  %324 = vmax.xlane.f32.xlu1 %v323_v10  ;;  %v321_v16 = vsel %vm317_vm2, %v246_v7, -1e+30  ;;  %v4073_v9 = vsub.s32 3, %v3968_v5 }
 0x22e   :  { %v332_v22 = vsel %vm322_vm3, %v321_v16, -inf }
 0x22f   :  { %v319_v19 = vsel %vm315_vm4, %v244_v13, -1e+30  ;;  %v439_v10 = vrot.slane %v3988_v11, %v4073_v9 }
 0x230   :  { %v326_v23 = vsel %vm322_vm3, %v319_v19, -inf }
 0x231   :  { %333 = vmax.xlane.f32.xlu1 %v332_v22  ;;  %327 = vmax.xlane.f32.xlu0 %v326_v23 }
 0x235   :  { %330 = vmax.xlane.f32.xlu0 %v329_v25 }
 0x2b6   :  { %v325_v26 = vpop.xlane.xlu1 %324 }
 0x2b7   :  { %v335_v27 = vsub.f32 %v318_v1, %v325_v26 }
 0x2b9   :  { %v339_v28 = vmul.f32 1.442695, %v335_v27 }
 0x2ba   :  { %v334_v29 = vpop.xlane.xlu1 %333  ;;  %v328_v30 = vpop.xlane.xlu0 %327 }
 0x2bb   :  { %3850 = vpow2.f32 %v339_v28  ;;  %v338_v31 = vsub.f32 %v321_v16, %v334_v29  ;;  %v336_v32 = vsub.f32 %v319_v19, %v328_v30 }
 0x2bd   :  { %v341_v33 = vmul.f32 1.442695, %v336_v32  ;;  %v345_v34 = vmul.f32 1.442695, %v338_v31 }
 0x2be   :  { %v331_v35 = vpop.xlane.xlu0 %330 }
 0x2bf   :  { %v337_v36 = vsub.f32 %v320_v24, %v331_v35  ;;  %3852 = vpow2.f32 %v341_v33 }
 0x2c0   :  { %3854 = vpow2.f32 %v345_v34 }
 0x2c1   :  { %v343_v37 = vmul.f32 1.442695, %v337_v36 }
 0x2c3   :  { %3856 = vpow2.f32 %v343_v37 }
 0x2c8   :  { %v3851_v38 = vpop.eup %3850 }
 0x2c9   :  { %v347_v39 = vsel %vm322_vm3, %v3851_v38, 0.0 }
 0x2ca   :  { %348 = vadd.xlane.f32.xlu0 %v347_v39 }
 0x2cc   :  { %v3853_v40 = vpop.eup %3852 }
 0x2cd   :  { %v350_v41 = vsel %vm322_vm3, %v3853_v40, 0.0  ;;  %v3855_v42 = vpop.eup %3854 }
 0x2ce   :  { %351 = vadd.xlane.f32.xlu1 %v350_v41  ;;  %v356_v45 = vsel %vm322_vm3, %v3855_v42, 0.0 }
 0x2d0   :  { %v3857_v43 = vpop.eup %3856 }
 0x2d1   :  { %v353_v44 = vsel %vm322_vm3, %v3857_v43, 0.0 }
 0x2d2   :  { %354 = vadd.xlane.f32.xlu0 %v353_v44  ;;  %357 = vadd.xlane.f32.xlu1 %v356_v45 }
 0x353   :  { %v349_v48 = vpop.xlane.xlu0 %348 }
 0x354   :  { %3858 = vrcp.f32 %v349_v48 }
 0x357   :  { %v352_v49 = vpop.xlane.xlu1 %351 }
 0x358   :  { %3860 = vrcp.f32 %v352_v49  ;;  %v642_v49 = vld [vmem:[%s4976_s3 + $0x180] sm:$0xff] }
 0x35b   :  { %v355_v50 = vpop.xlane.xlu0 %354  ;;  %v358_v51 = vpop.xlane.xlu1 %357 }
 0x35c   :  { %3862 = vrcp.f32 %v355_v50  ;;  %v650_v50 = vld [vmem:[%s4976_s3 + $0x1c0] sm:$0xff] }
 0x35d   :  { %3864 = vrcp.f32 %v358_v51  ;;  %v643_v51 = vld [vmem:[%s4976_s3 + $0x188] sm:$0xff] }
 0x361   :  { %v3859_v52 = vpop.eup %3858 }
 0x362   :  { %v363_v54 = vmul.f32 %v3859_v52, %v3851_v38  ;;  %v3276_v52 = vcombine.high %v642_v49, %v650_v50 }
 0x364   :  { %1076 = vmatprep.subr.bf16.mxu1 %v3276_v52 }
 0x365   :  { %v3861_v53 = vpop.eup %3860 }
 0x366   :  { %v364_v55 = vmul.f32 %v3861_v53, %v3853_v40  ;;  %v651_v53 = vld [vmem:[%s4976_s3 + $0x1c8] sm:$0xff] }
 0x368   :  { %v367_v57 = vpack.c.bf16 %v364_v55, %v363_v54  ;;  %v3275_v54 = vcombine.low %v642_v49, %v650_v50  ;;  %v3277_v55 = vcombine.low %v643_v51, %v651_v53  ;;  %v3890_v49 = vld [vmem:[%s4979_s6] sm:$0xff] }
 0x369   :  { %v3863_v56 = vpop.eup %3862 }
 0x36a   :  { %v3865_v58 = vpop.eup %3864  ;;  %v365_v59 = vmul.f32 %v3863_v56, %v3857_v43  ;;  %3685 = vmatprep.mubr.msk.bf16.mxu1 %vm322_vm3, %v367_v57  ;;  %v3278_v56 = vcombine.high %v643_v51, %v651_v53  ;;  %v626_v57 = vld [vmem:[%s4976_s3 + $0x100] sm:$0xff]  ;;  %v4173_v51 = vsub.s32 6, %v3968_v5 }
 0x36b   :  { %v366_v60 = vmul.f32 %v3865_v58, %v3855_v42  ;;  %v634_v58 = vld [vmem:[%s4976_s3 + $0x140] sm:$0xff] }
 0x36c   :  { %1129 = vmatprep.subr.bf16.mxu0 %v3278_v56  ;;  %v3259_v62 = vcombine.low %v626_v57, %v634_v58 }
 0x36d   :  { %v368_v61 = vpack.c.bf16 %v366_v60, %v365_v59  ;;  %v627_v59 = vld [vmem:[%s4976_s3 + $0x108] sm:$0xff]  ;;  %v3260_v60 = vcombine.high %v626_v57, %v634_v58 }
 0x36f   :  { %3686 = vmatmul.mubr.msk.bf16.vlgmr.msra.gmra.mxu1 %vm322_vm3, %v368_v61  ;;  %v635_v61 = vld [vmem:[%s4976_s3 + $0x148] sm:$0xff] }
 0x370   :  { %1100 = vmatprep.mubr.bf16.mxu1 %v3914_v3  ;;  %1077 = vmatpush1.bf16.msra.mxu1 %v3275_v54  ;;  %v3261_v63 = vcombine.low %v627_v59, %v635_v61  ;;  %v587_v54 = vrot.slane %v3890_v49, %v4173_v51 }
 0x371   :  { %1078 = vmatprep.subr.bf16.mxu1 %v3260_v60 }
 0x374   :  { %1079 = vmatpush1.bf16.msra.mxu1 %v3259_v62  ;;  %v637_v62 = vld [vmem:[%s4976_s3 + $0x158] sm:$0xff] }
 0x42f   :  { %v3687_v0 = vpop.f32.mrf.mxu1 }
 0x431   :  { %v411_v2 = vpop.f32.mrf.mxu1 }
 0x433   :  { %v3688_v4 = vpop.f32.mrf.mxu1 }
 0x434   :  { %v427_v1 = vpack.c.bf16 %v3688_v4, %v3687_v0  ;;  %v3262_v0 = vcombine.high %v627_v59, %v635_v61  ;;  %v618_v4 = vld [vmem:[%s4976_s3 + $0xc0] sm:$0xff]  ;;  %v628_v59 = vld [vmem:[%s4976_s3 + $0x110] sm:$0xff] }
 0x435   :  { %v414_v6 = vpop.f32.mrf.mxu1  ;;  %v636_v61 = vld [vmem:[%s4976_s3 + $0x150] sm:$0xff] }
 0x436   :  { %v426_v7 = vpack.c.bf16 %v414_v6, %v411_v2  ;;  %v610_v2 = vld [vmem:[%s4976_s3 + $0x80] sm:$0xff]  ;;  %v611_v6 = vld [vmem:[%s4976_s3 + $0x88] sm:$0xff] }
 0x438   :  { %3697 = vmatprep.mubr.msk.bf16.mxu0 %vm84_vm0, %v426_v7  ;;  %v3244_v7 = vcombine.high %v610_v2, %v618_v4 }
 0x439   :  { %3698 = vmatmul.mubr.msk.bf16.vlgmr.msra.gmra.mxu0 %vm84_vm0, %v427_v1  ;;  %v619_v1 = vld [vmem:[%s4976_s3 + $0xc8] sm:$0xff] }
 0x43a   :  { %1153 = vmatprep.mubr.bf16.mxu0 %v3914_v3  ;;  %1130 = vmatpush1.bf16.msra.mxu0 %v3277_v55 }
 0x43b   :  { %1131 = vmatprep.subr.bf16.mxu0 %v3262_v0  ;;  %1080 = vmatprep.subr.bf16.mxu1 %v3244_v7  ;;  %v3264_v7 = vcombine.high %v628_v59, %v636_v61 }
 0x43e   :  { %1132 = vmatpush1.bf16.msra.mxu0 %v3261_v63 }
 0x4f9   :  { %v3699_v12 = vpop.f32.mrf.mxu0 }
 0x4fa   :  { %v513_v16 = vadd.f32 %v3699_v12, %v439_v10  ;;  %v3245_v12 = vcombine.low %v611_v6, %v619_v1 }
 0x4fb   :  { %v504_v13 = vpop.f32.mrf.mxu0 }
 0x4fc   :  { %v505_v19 = vadd.f32 %v504_v13, %v439_v10  ;;  %v521_v28 = vadd.f32 %v513_v16, %v4011_v17  ;;  %v3246_v13 = vcombine.high %v611_v6, %v619_v1  ;;  %v594_v16 = vld [vmem:[%s4976_s3] sm:$0xff] }
 0x4fd   :  { %v3700_v22 = vpop.f32.mrf.mxu0 }
 0x4fe   :  { %v519_v23 = vadd.f32 %v505_v19, %v3998_v14  ;;  %v516_v25 = vadd.f32 %v3700_v22, %v439_v10  ;;  %v529_v11 = vsel %vm84_vm0, %v521_v28, 0.0  ;;  %1133 = vmatprep.subr.bf16.mxu0 %v3246_v13  ;;  %v602_v19 = vld [vmem:[%s4976_s3 + $0x40] sm:$0xff]  ;;  %v595_v22 = vld [vmem:[%s4976_s3 + $0x8] sm:$0xff] }
 0x4ff   :  { %v507_v24 = vpop.f32.mrf.mxu0  ;;  %1134 = vmatpush1.bf16.msra.mxu0 %v3245_v12  ;;  %v620_v12 = vld [vmem:[%s4976_s3 + $0xd0] sm:$0xff] }
 0x500   :  { %v508_v26 = vadd.f32 %v507_v24, %v439_v10  ;;  %v523_v27 = vsel %vm84_vm0, %v519_v23, 0.0  ;;  %v522_v31 = vadd.f32 %v516_v25, %v4016_v18  ;;  %v3243_v10 = vcombine.low %v610_v2, %v618_v4  ;;  %v603_v24 = vld [vmem:[%s4976_s3 + $0x48] sm:$0xff] }
 0x501   :  { %524 = vadd.xlane.f32.xlu0 %v523_v27  ;;  %v3227_v25 = vcombine.low %v594_v16, %v602_v19  ;;  %v3230_v27 = vcombine.high %v595_v22, %v603_v24 }
 0x502   :  { %v520_v29 = vadd.f32 %v508_v26, %v4003_v15  ;;  %v532_v14 = vsel %vm84_vm0, %v522_v31, 0.0  ;;  %1081 = vmatpush1.bf16.msra.mxu1 %v3243_v10  ;;  %v3229_v26 = vcombine.low %v595_v22, %v603_v24  ;;  %v612_v10 = vld [vmem:[%s4976_s3 + $0x90] sm:$0xff] }
 0x503   :  { %1135 = vmatprep.subr.bf16.mxu0 %v3230_v27  ;;  %v597_v27 = vld [vmem:[%s4976_s3 + $0x18] sm:$0xff] }
 0x504   :  { %v526_v30 = vsel %vm84_vm0, %v520_v29, 0.0  ;;  %1136 = vmatpush1.bf16.msra.mxu0 %v3229_v26  ;;  %v604_v26 = vld [vmem:[%s4976_s3 + $0x50] sm:$0xff] }
 0x505   :  { %527 = vadd.xlane.f32.xlu1 %v526_v30  ;;  %530 = vadd.xlane.f32.xlu0 %v529_v11  ;;  %v645_v30 = vld [vmem:[%s4976_s3 + $0x198] sm:$0xff] }
 0x509   :  { %533 = vadd.xlane.f32.xlu1 %v532_v14 }
 0x58a   :  { %v525_v32 = vpop.xlane.xlu0 %524 }
 0x58b   :  { %v536_v33 = vmul.f32 0.015625, %v525_v32 }
 0x58d   :  { %v4085_v34 = vsub.f32 %v519_v23, %v536_v33  ;;  %v3228_v23 = vcombine.high %v594_v16, %v602_v19  ;;  %v3263_v16 = vcombine.low %v628_v59, %v636_v61  ;;  %v606_v61 = vld [vmem:[%s4976_s3 + $0x60] sm:$0xff] }
 0x58e   :  { %v528_v35 = vpop.xlane.xlu1 %527  ;;  %v531_v17 = vpop.xlane.xlu0 %530 }
 0x58f   :  { %v537_v36 = vmul.f32 0.015625, %v528_v35  ;;  %v538_v37 = vmul.f32 0.015625, %v531_v17  ;;  %v544_v15 = vmul.f32 %v4085_v34, %v4085_v34  ;;  %1082 = vmatprep.subr.bf16.mxu1 %v3228_v23  ;;  %v3248_v23 = vcombine.high %v612_v10, %v620_v12 }
 0x590   :  { %1083 = vmatpush1.bf16.msra.mxu1 %v3227_v25  ;;  %v596_v25 = vld [vmem:[%s4976_s3 + $0x10] sm:$0xff] }
 0x591   :  { %v4089_v38 = vsub.f32 %v520_v29, %v537_v36  ;;  %v4091_v39 = vsub.f32 %v521_v28, %v538_v37  ;;  %v548_v18 = vsel %vm84_vm0, %v544_v15, 0.0  ;;  %v644_v28 = vld [vmem:[%s4976_s3 + $0x190] sm:$0xff] }
 0x592   :  { %v534_v40 = vpop.xlane.xlu1 %533  ;;  %549 = vadd.xlane.f32.xlu0 %v548_v18  ;;  %v652_v29 = vld [vmem:[%s4976_s3 + $0x1d0] sm:$0xff] }
 0x593   :  { %v539_v41 = vmul.f32 0.015625, %v534_v40  ;;  %v545_v42 = vmul.f32 %v4089_v38, %v4089_v38  ;;  %v546_v43 = vmul.f32 %v4091_v39, %v4091_v39  ;;  %v3280_v11 = vcombine.high %v644_v28, %v652_v29 }
 0x594   :  { %v3279_v14 = vcombine.low %v644_v28, %v652_v29  ;;  %v605_v28 = vld [vmem:[%s4976_s3 + $0x58] sm:$0xff] }
 0x595   :  { %v4098_v44 = vsub.f32 %v522_v31, %v539_v41  ;;  %v551_v45 = vsel %vm84_vm0, %v545_v42, 0.0  ;;  %v554_v46 = vsel %vm84_vm0, %v546_v43, 0.0  ;;  %v653_v31 = vld [vmem:[%s4976_s3 + $0x1d8] sm:$0xff]  ;;  %1182 = vmatprep.subr.bf16.mxu1 %v3280_v11 }
 0x596   :  { %552 = vadd.xlane.f32.xlu1 %v551_v45  ;;  %555 = vadd.xlane.f32.xlu0 %v554_v46  ;;  %v3281_v32 = vcombine.low %v645_v30, %v653_v31  ;;  %v3282_v33 = vcombine.high %v645_v30, %v653_v31  ;;  %v3247_v30 = vcombine.low %v612_v10, %v620_v12  ;;  %v656_v10 = vld [vmem:[%s4976_s3 + $0x1f0] sm:$0xff]  ;;  %v649_v12 = vld [vmem:[%s4976_s3 + $0x1b8] sm:$0xff] }
 0x597   :  { %v547_v47 = vmul.f32 %v4098_v44, %v4098_v44 }
 0x598   :  { %1235 = vmatprep.subr.bf16.mxu0 %v3282_v33  ;;  %v646_v33 = vld [vmem:[%s4976_s3 + $0x1a0] sm:$0xff] }
 0x599   :  { %v557_v48 = vsel %vm84_vm0, %v547_v47, 0.0  ;;  %v4166_v47 = vsub.s32 5, %v3968_v5 }
 0x59a   :  { %558 = vadd.xlane.f32.xlu1 %v557_v48 }
 0x59b   :  { %v579_v50 = vrot.slane %v3890_v49, %v4166_v47 }
 0x61b   :  { %v550_v35 = vpop.xlane.xlu0 %549 }
 0x61c   :  { %v560_v17 = vmul.f32 0.015625, %v550_v35  ;;  %v654_v35 = vld [vmem:[%s4976_s3 + $0x1e0] sm:$0xff] }
 0x61e   :  { %v564_v36 = vadd.f32 1e-05, %v560_v17  ;;  %v647_v17 = vld [vmem:[%s4976_s3 + $0x1a8] sm:$0xff] }
 0x61f   :  { %v553_v37 = vpop.xlane.xlu1 %552  ;;  %v556_v15 = vpop.xlane.xlu0 %555 }
 0x620   :  { %3866 = vrsqrt.f32 %v564_v36  ;;  %v561_v18 = vmul.f32 0.015625, %v553_v37  ;;  %v562_v40 = vmul.f32 0.015625, %v556_v15  ;;  %v655_v36 = vld [vmem:[%s4976_s3 + $0x1e8] sm:$0xff]  ;;  %v3231_v37 = vcombine.low %v596_v25, %v604_v26 }
 0x621   :  { %v3233_v15 = vcombine.low %v597_v27, %v605_v28 }
 0x622   :  { %v565_v41 = vadd.f32 1e-05, %v561_v18  ;;  %v566_v42 = vadd.f32 1e-05, %v562_v40  ;;  %v3284_v18 = vcombine.high %v646_v33, %v654_v35  ;;  %v3286_v40 = vcombine.high %v647_v17, %v655_v36 }
 0x623   :  { %v559_v43 = vpop.xlane.xlu1 %558 }
 0x624   :  { %3868 = vrsqrt.f32 %v565_v41  ;;  %v563_v45 = vmul.f32 0.015625, %v559_v43  ;;  %v630_v41 = vld [vmem:[%s4976_s3 + $0x120] sm:$0xff]  ;;  %v631_v43 = vld [vmem:[%s4976_s3 + $0x128] sm:$0xff] }
 0x625   :  { %3870 = vrsqrt.f32 %v566_v42  ;;  %v638_v42 = vld [vmem:[%s4976_s3 + $0x160] sm:$0xff] }
 0x626   :  { %v567_v46 = vadd.f32 1e-05, %v563_v45  ;;  %v639_v45 = vld [vmem:[%s4976_s3 + $0x168] sm:$0xff]  ;;  %v3268_v49 = vcombine.high %v630_v41, %v638_v42 }
 0x628   :  { %3872 = vrsqrt.f32 %v567_v46  ;;  %v3283_v46 = vcombine.low %v646_v33, %v654_v35  ;;  %v617_v33 = vld [vmem:[%s4976_s3 + $0xb8] sm:$0xff] }
 0x629   :  { %v625_v35 = vld [vmem:[%s4976_s3 + $0xf8] sm:$0xff] }
 0x62d   :  { %v3867_v48 = vpop.eup %3866 }
 0x62e   :  { %v572_v52 = vmul.f32 %v3867_v48, %v4085_v34  ;;  %v629_v34 = vld [vmem:[%s4976_s3 + $0x118] sm:$0xff]  ;;  %v3285_v48 = vcombine.low %v647_v17, %v655_v36 }
 0x62f   :  { %v3266_v1 = vcombine.high %v629_v34, %v637_v62  ;;  %v3265_v19 = vcombine.low %v629_v34, %v637_v62  ;;  %v599_v34 = vld [vmem:[%s4976_s3 + $0x28] sm:$0xff] }
 0x630   :  { %v580_v55 = vmul.f32 %v579_v50, %v572_v52  ;;  %v614_v52 = vld [vmem:[%s4976_s3 + $0xa0] sm:$0xff]  ;;  %v607_v62 = vld [vmem:[%s4976_s3 + $0x68] sm:$0xff] }
 0x631   :  { %v3869_v53 = vpop.eup %3868 }
 0x632   :  { %v573_v56 = vmul.f32 %v3869_v53, %v4089_v38  ;;  %v3871_v57 = vpop.eup %3870  ;;  %v4190_v38 = vadd.f32 %v587_v54, %v580_v55  ;;  %v622_v53 = vld [vmem:[%s4976_s3 + $0xe0] sm:$0xff]  ;;  %v623_v55 = vld [vmem:[%s4976_s3 + $0xe8] sm:$0xff] }
 0x633   :  { %v574_v0 = vmul.f32 %v3871_v57, %v4091_v39  ;;  %v613_v39 = vld [vmem:[%s4976_s3 + $0x98] sm:$0xff]  ;;  %v3269_v57 = vcombine.low %v631_v43, %v639_v45 }
 0x634   :  { %v581_v58 = vmul.f32 %v579_v50, %v573_v56  ;;  %v3267_v56 = vcombine.low %v630_v41, %v638_v42  ;;  %v601_v41 = vld [vmem:[%s4976_s3 + $0x38] sm:$0xff] }
 0x635   :  { %v3873_v60 = vpop.eup %3872  ;;  %v582_v13 = vmul.f32 %v579_v50, %v574_v0  ;;  %v3251_v0 = vcombine.low %v614_v52, %v622_v53  ;;  %v609_v42 = vld [vmem:[%s4976_s3 + $0x78] sm:$0xff] }
 0x636   :  { %v4192_v63 = vadd.f32 %v587_v54, %v581_v58  ;;  %v575_v2 = vmul.f32 %v3873_v60, %v4098_v44  ;;  %v621_v44 = vld [vmem:[%s4976_s3 + $0xd8] sm:$0xff]  ;;  %v3252_v58 = vcombine.high %v614_v52, %v622_v53  ;;  %v598_v60 = vld [vmem:[%s4976_s3 + $0x20] sm:$0xff] }
 0x637   :  { %v3250_v24 = vcombine.high %v613_v39, %v621_v44  ;;  %v4232_v29 = vadd.f32 %v587_v54, %v582_v13  ;;  %v3249_v11 = vcombine.low %v613_v39, %v621_v44  ;;  %v657_v39 = vld [vmem:[%s4976_s3 + $0x1f8] sm:$0xff]  ;;  %v3235_v44 = vcombine.low %v598_v60, %v606_v61 }
 0x638   :  { %v4198_v4 = vpack.c.bf16 %v4192_v63, %v4190_v38  ;;  %v583_v6 = vmul.f32 %v579_v50, %v575_v2  ;;  %v3270_v50 = vcombine.high %v631_v43, %v639_v45  ;;  %v3237_v13 = vcombine.low %v599_v34, %v607_v62  ;;  %v3722_v52 = vld [vmem:[%s4977_s4 + $0x78] sm:$0xff]  }
 0x639   :  { %v3257_v45 = vcombine.low %v617_v33, %v625_v35  ;;  %v3723_v53 = vld [vmem:[%s4977_s4 + $0xf8] sm:$0xff]  }
 0x63a   :  { %3291 = vmatmul.mubr.msk.bf16.vlgmr.msra.gmra.mxu1 %vm84_vm0, %v4198_v4  ;;  %3293 = vmatmul.mubr.msk.bf16.vlgmr.msra.gmra.mxu0 %vm84_vm0, %v4198_v4  ;;  %v4216_v22 = vadd.f32 %v587_v54, %v583_v6  ;;  %v615_v54 = vld [vmem:[%s4976_s3 + $0xa8] sm:$0xff]  ;;  %v3236_v6 = vcombine.high %v598_v60, %v606_v61 }
 0x63b   :  { %1183 = vmatpush1.bf16.msra.mxu1 %v3279_v14  ;;  %1236 = vmatpush1.bf16.msra.mxu0 %v3281_v32  ;;  %v3232_v14 = vcombine.high %v596_v25, %v604_v26  ;;  %v3234_v32 = vcombine.high %v597_v27, %v605_v28  ;;  %v3254_v59 = vcombine.high %v615_v54, %v623_v55  ;;  %v633_v25 = vld [vmem:[%s4976_s3 + $0x138] sm:$0xff]  ;;  %v3732_v60 = vld [vmem:[%s4977_s4 + $0x28] sm:$0xff]  }
 0x63c   :  { %4990 = vst [vmem:[#allocation8_spill] sm:$0xff] %v4216_v22  ;;  %1184 = vmatprep.subr.bf16.mxu1 %v3264_v7  ;;  %1237 = vmatprep.subr.bf16.mxu0 %v3266_v1  ;;  %v4236_v31 = vpack.c.bf16 %v4216_v22, %v4232_v29  ;;  %v3253_v2 = vcombine.low %v615_v54, %v623_v55  ;;  %v648_v1 = vld [vmem:[%s4976_s3 + $0x1b0] sm:$0xff]  ;;  %v641_v26 = vld [vmem:[%s4976_s3 + $0x178] sm:$0xff]  ;;  %v3733_v61 = vld [vmem:[%s4977_s4 + $0xa8] sm:$0xff]  }
 0x63d   :  { %1110 = vmatprep.mubr.bf16.mxu1 %v3914_v3  ;;  %1163 = vmatprep.mubr.bf16.mxu0 %v3914_v3  ;;  %v3238_v7 = vcombine.high %v599_v34, %v607_v62  ;;  %v3287_v27 = vcombine.low %v648_v1, %v656_v10  ;;  %v3289_v28 = vcombine.low %v649_v12, %v657_v39  ;;  %v3724_v54 = vld [vmem:[%s4977_s4 + $0x38] sm:$0xff]   ;;  %v3734_v34 = vld [vmem:[%s4977_s4 + $0x60] sm:$0xff]  }
 0x63e   :  { %v3273_v36 = vcombine.low %v633_v25, %v641_v26  ;;  %v3725_v55 = vld [vmem:[%s4977_s4 + $0xb8] sm:$0xff]   ;;  %v3735_v62 = vld [vmem:[%s4977_s4 + $0xe0] sm:$0xff]  }
 0x63f   :  { %1185 = vmatpush1.bf16.msra.mxu1 %v3263_v16  ;;  %1238 = vmatpush1.bf16.msra.mxu0 %v3265_v19  ;;  %v3288_v16 = vcombine.high %v648_v1, %v656_v10  ;;  %v3290_v19 = vcombine.high %v649_v12, %v657_v39  ;;  %v3741_v1 = vld [vmem:[%s4977_s4 + $0x98] sm:$0xff]   ;;  %v3742_v10 = vld [vmem:[%s4977_s4 + $0x50] sm:$0xff]  }
 0x640   :  { %1186 = vmatprep.subr.bf16.mxu1 %v3248_v23  ;;  %1239 = vmatprep.subr.bf16.mxu0 %v3250_v24  ;;  %v632_v23 = vld [vmem:[%s4976_s3 + $0x130] sm:$0xff] }
 0x641   :  { %v640_v24 = vld [vmem:[%s4976_s3 + $0x170] sm:$0xff] }
 0x642   :  { %3292 = vmatmul.mubr.msk.bf16.gmra.mxu1 %vm84_vm0, %v4236_v31  ;;  %3294 = vmatmul.mubr.msk.bf16.gmra.mxu0 %vm84_vm0, %v4236_v31  ;;  %v3271_v17 = vcombine.low %v632_v23, %v640_v24  ;;  %v3743_v12 = vld [vmem:[%s4977_s4 + $0xd0] sm:$0xff]  }
 0x643   :  { %1187 = vmatpush1.bf16.msra.mxu1 %v3247_v30  ;;  %1240 = vmatpush1.bf16.msra.mxu0 %v3249_v11  ;;  %v3272_v30 = vcombine.high %v632_v23, %v640_v24  ;;  %v3274_v11 = vcombine.high %v633_v25, %v641_v26  ;;  %v3744_v39 = vld [vmem:[%s4977_s4 + $0x10] sm:$0xff]   ;;  %v3749_v23 = vld [vmem:[%s4977_s4 + $0x88] sm:$0xff]   ;;  %v3750_v24 = vld [vmem:[%s4977_s4 + $0x40] sm:$0xff]  }
 0x644   :  { %1188 = vmatprep.subr.bf16.mxu1 %v3232_v14  ;;  %1241 = vmatprep.subr.bf16.mxu0 %v3234_v32  ;;  %v616_v14 = vld [vmem:[%s4976_s3 + $0xb0] sm:$0xff]  ;;  %v3751_v25 = vld [vmem:[%s4977_s4 + $0xc0] sm:$0xff]  }
 0x645   :  { %1206 = vmatprep.mubr.bf16.mxu1 %v3914_v3  ;;  %1259 = vmatprep.mubr.bf16.mxu0 %v3914_v3  ;;  %v624_v32 = vld [vmem:[%s4976_s3 + $0xf0] sm:$0xff]  ;;  %v3752_v26 = vld [vmem:[%s4977_s4] sm:$0xff]  }
 0x646   :  { %v3255_v43 = vcombine.low %v616_v14, %v624_v32 }
 0x647   :  { %1189 = vmatpush1.bf16.msra.mxu1 %v3231_v37  ;;  %1242 = vmatpush1.bf16.msra.mxu0 %v3233_v15  ;;  %v3256_v37 = vcombine.high %v616_v14, %v624_v32  ;;  %v3258_v15 = vcombine.high %v617_v33, %v625_v35 }
 0x648   :  { %1288 = vmatprep.subr.bf16.mxu1 %v3284_v18  ;;  %1341 = vmatprep.subr.bf16.mxu0 %v3286_v40  ;;  %v600_v18 = vld [vmem:[%s4976_s3 + $0x30] sm:$0xff] }
 0x649   :  { %v608_v40 = vld [vmem:[%s4976_s3 + $0x70] sm:$0xff] }
 0x64a   :  { %3295 = vmatmul.mubr.msk.bf16.vlgmr.msra.gmra.mxu1 %vm84_vm0, %v4198_v4  ;;  %3297 = vmatmul.mubr.msk.bf16.vlgmr.msra.gmra.mxu0 %vm84_vm0, %v4198_v4 }
 0x64b   :  { %1289 = vmatpush1.bf16.msra.mxu1 %v3283_v46  ;;  %1342 = vmatpush1.bf16.msra.mxu0 %v3285_v48  ;;  %v3240_v46 = vcombine.high %v600_v18, %v608_v40  ;;  %v3242_v48 = vcombine.high %v601_v41, %v609_v42 }
 0x64c   :  { %1290 = vmatprep.subr.bf16.mxu1 %v3268_v49  ;;  %1343 = vmatprep.subr.bf16.mxu0 %v3270_v50  ;;  %v3239_v49 = vcombine.low %v600_v18, %v608_v40  ;;  %v3241_v50 = vcombine.low %v601_v41, %v609_v42 }
 0x64d   :  { %1216 = vmatprep.mubr.bf16.mxu1 %v3914_v3  ;;  %1269 = vmatprep.mubr.bf16.mxu0 %v3914_v3 }
 0x64f   :  { %1291 = vmatpush1.bf16.msra.mxu1 %v3267_v56  ;;  %1344 = vmatpush1.bf16.msra.mxu0 %v3269_v57  ;;  %v3726_v56 = vld [vmem:[%s4977_s4 + $0x70] sm:$0xff]  }
 0x650   :  { %1292 = vmatprep.subr.bf16.mxu1 %v3252_v58  ;;  %1345 = vmatprep.subr.bf16.mxu0 %v3254_v59  ;;  %v3727_v57 = vld [vmem:[%s4977_s4 + $0xf0] sm:$0xff]  }
 0x651   :  { %v3728_v58 = vld [vmem:[%s4977_s4 + $0x30] sm:$0xff]  }
 0x652   :  { %3296 = vmatmul.mubr.msk.bf16.gmra.mxu1 %vm84_vm0, %v4236_v31  ;;  %3298 = vmatmul.mubr.msk.bf16.gmra.mxu0 %vm84_vm0, %v4236_v31  ;;  %v3729_v59 = vld [vmem:[%s4977_s4 + $0xb0] sm:$0xff]  }
 0x653   :  { %1293 = vmatpush1.bf16.msra.mxu1 %v3251_v0  ;;  %1346 = vmatpush1.bf16.msra.mxu0 %v3253_v2  ;;  %v3736_v0 = vld [vmem:[%s4977_s4 + $0x20] sm:$0xff]  }
 0x654   :  { %1294 = vmatprep.subr.bf16.mxu1 %v3236_v6  ;;  %1347 = vmatprep.subr.bf16.mxu0 %v3238_v7  ;;  %v3737_v2 = vld [vmem:[%s4977_s4 + $0xa0] sm:$0xff]   ;;  %v3738_v6 = vld [vmem:[%s4977_s4 + $0x58] sm:$0xff]  }
 0x655   :  { %1312 = vmatprep.mubr.bf16.mxu1 %v3914_v3  ;;  %1365 = vmatprep.mubr.bf16.mxu0 %v3914_v3  ;;  %v3740_v7 = vld [vmem:[%s4977_s4 + $0x18] sm:$0xff]  }
 0x657   :  { %1295 = vmatpush1.bf16.msra.mxu1 %v3235_v44  ;;  %1348 = vmatpush1.bf16.msra.mxu0 %v3237_v13  ;;  %v3745_v44 = vld [vmem:[%s4977_s4 + $0x90] sm:$0xff]   ;;  %v3746_v13 = vld [vmem:[%s4977_s4 + $0x48] sm:$0xff]  }
 0x658   :  { %1394 = vmatprep.subr.bf16.mxu1 %v3288_v16  ;;  %1447 = vmatprep.subr.bf16.mxu0 %v3290_v19  ;;  %v3747_v16 = vld [vmem:[%s4977_s4 + $0xc8] sm:$0xff]  }
 0x659   :  { %v3748_v19 = vld [vmem:[%s4977_s4 + $0x8] sm:$0xff]  }
 0x65a   :  { %3299 = vmatmul.mubr.msk.bf16.vlgmr.msra.gmra.mxu1 %vm84_vm0, %v4198_v4  ;;  %3301 = vmatmul.mubr.msk.bf16.vlgmr.msra.gmra.mxu0 %vm84_vm0, %v4198_v4 }
 0x65b   :  { %1395 = vmatpush1.bf16.msra.mxu1 %v3287_v27  ;;  %1448 = vmatpush1.bf16.msra.mxu0 %v3289_v28  ;;  %v3753_v27 = vld [vmem:[%s4977_s4 + $0x80] sm:$0xff]   ;;  %v3754_v28 = vld [vmem:[%s4977_s4 + $0x178] sm:$0xff]  }
 0x65c   :  { %1396 = vmatprep.subr.bf16.mxu1 %v3272_v30  ;;  %1449 = vmatprep.subr.bf16.mxu0 %v3274_v11  ;;  %v3755_v30 = vld [vmem:[%s4977_s4 + $0x1f8] sm:$0xff]   ;;  %v4479_v11 = vld [vmem:[%s4978_s5] sm:$0xff] }
 0x65d   :  { %1322 = vmatprep.mubr.bf16.mxu1 %v3914_v3  ;;  %1375 = vmatprep.mubr.bf16.mxu0 %v3914_v3  ;;  %v669_v33 = vrot.slane %v4479_v11, %v3977_v8  ;;  %v677_v35 = vrot.slane %v4479_v11, %v4073_v9 }
 0x65f   :  { %1397 = vmatpush1.bf16.msra.mxu1 %v3271_v17  ;;  %1450 = vmatpush1.bf16.msra.mxu0 %v3273_v36  ;;  %v665_v17 = vrot.slane %v4479_v11, %v4024_v20  ;;  %v673_v36 = vrot.slane %v4479_v11, %v4027_v21 }
 0x660   :  { %1398 = vmatprep.subr.bf16.mxu1 %v3256_v37  ;;  %1451 = vmatprep.subr.bf16.mxu0 %v3258_v15 }
 0x662   :  { %3300 = vmatmul.mubr.msk.bf16.gmra.mxu1 %vm84_vm0, %v4236_v31  ;;  %3302 = vmatmul.mubr.msk.bf16.gmra.mxu0 %vm84_vm0, %v4236_v31 }
 0x663   :  { %1399 = vmatpush1.bf16.msra.mxu1 %v3255_v43  ;;  %1452 = vmatpush1.bf16.msra.mxu0 %v3257_v45 }
 0x664   :  { %1400 = vmatprep.subr.bf16.mxu1 %v3240_v46  ;;  %1453 = vmatprep.subr.bf16.mxu0 %v3242_v48 }
 0x665   :  { %1418 = vmatprep.mubr.bf16.mxu1 %v3914_v3  ;;  %1471 = vmatprep.mubr.bf16.mxu0 %v3914_v3 }
 0x667   :  { %1401 = vmatpush1.bf16.msra.mxu1 %v3239_v49  ;;  %1454 = vmatpush1.bf16.msra.mxu0 %v3241_v50 }
 0x668   :  { %3449 = vmatprep.subr.bf16.mxu1 %v3722_v52  ;;  %3477 = vmatprep.subr.bf16.mxu0 %v3723_v53 }
 0x66a   :  { %3303 = vmatmul.mubr.msk.bf16.vlgmr.msra.gmra.mxu1 %vm84_vm0, %v4198_v4  ;;  %3305 = vmatmul.mubr.msk.bf16.vlgmr.msra.gmra.mxu0 %vm84_vm0, %v4198_v4  ;;  %v3730_v4 = vld [vmem:[%s4977_s4 + $0x68] sm:$0xff]  }
 0x66b   :  { %1428 = vmatprep.mubr.bf16.mxu1 %v3914_v3  ;;  %1481 = vmatprep.mubr.bf16.mxu0 %v3914_v3  ;;  %v3731_v3 = vld [vmem:[%s4977_s4 + $0xe8] sm:$0xff]  }
 0x66c   :  { %3450 = vmatpush3.bf16.msra.mxu1 %v3724_v54  ;;  %3478 = vmatpush3.bf16.msra.mxu0 %v3725_v55 }
 0x66d   :  { %3451 = vmatprep.subr.bf16.mxu1 %v3726_v56  ;;  %3479 = vmatprep.subr.bf16.mxu0 %v3727_v57 }
 0x670   :  { %3452 = vmatpush3.bf16.msra.mxu1 %v3728_v58  ;;  %3480 = vmatpush3.bf16.msra.mxu0 %v3729_v59 }
 0x671   :  { %3453 = vmatprep.subr.bf16.mxu1 %v3730_v4  ;;  %3481 = vmatprep.subr.bf16.mxu0 %v3731_v3 }
 0x672   :  { %3304 = vmatmul.mubr.msk.bf16.gmra.mxu1 %vm84_vm0, %v4236_v31  ;;  %3306 = vmatmul.mubr.msk.bf16.gmra.mxu0 %vm84_vm0, %v4236_v31  ;;  %v3739_v31 = vld [vmem:[%s4977_s4 + $0xd8] sm:$0xff]  }
 0x674   :  { %3454 = vmatpush3.bf16.msra.mxu1 %v3732_v60  ;;  %3482 = vmatpush3.bf16.msra.mxu0 %v3733_v61 }
 0x675   :  { %3455 = vmatprep.subr.bf16.mxu1 %v3734_v34  ;;  %3483 = vmatprep.subr.bf16.mxu0 %v3735_v62 }
 0x678   :  { %3456 = vmatpush3.bf16.msra.mxu1 %v3736_v0  ;;  %3484 = vmatpush3.bf16.msra.mxu0 %v3737_v2 }
 0x679   :  { %3457 = vmatprep.subr.bf16.mxu1 %v3738_v6  ;;  %3485 = vmatprep.subr.bf16.mxu0 %v3739_v31  ;;  %v3756_v6 = vld [vmem:[%s4977_s4 + $0x138] sm:$0xff]  }
 0x67a   :  { %v3757_v31 = vld [vmem:[%s4977_s4 + $0x1b8] sm:$0xff]  }
 0x67c   :  { %3458 = vmatpush3.bf16.msra.mxu1 %v3740_v7  ;;  %3486 = vmatpush3.bf16.msra.mxu0 %v3741_v1 }
 0x67d   :  { %3459 = vmatprep.subr.bf16.mxu1 %v3742_v10  ;;  %3487 = vmatprep.subr.bf16.mxu0 %v3743_v12 }
 0x680   :  { %3460 = vmatpush3.bf16.msra.mxu1 %v3744_v39  ;;  %3488 = vmatpush3.bf16.msra.mxu0 %v3745_v44  ;;  %v3758_v44 = vld [vmem:[%s4977_s4 + $0x170] sm:$0xff]  }
 0x681   :  { %3461 = vmatprep.subr.bf16.mxu1 %v3746_v13  ;;  %3489 = vmatprep.subr.bf16.mxu0 %v3747_v16  ;;  %v3759_v13 = vld [vmem:[%s4977_s4 + $0x1f0] sm:$0xff]   ;;  %v4502_v16 = vsub.s32 7, %v3968_v5 }
 0x683   :  { %4991 = vst [vmem:[#allocation9_spill] sm:$0xff] %v4502_v16 }
 0x684   :  { %3462 = vmatpush3.bf16.msra.mxu1 %v3748_v19  ;;  %3490 = vmatpush3.bf16.msra.mxu0 %v3749_v23 }
 0x685   :  { %3463 = vmatprep.subr.bf16.mxu1 %v3750_v24  ;;  %3491 = vmatprep.subr.bf16.mxu0 %v3751_v25 }
 0x688   :  { %3464 = vmatpush3.bf16.msra.mxu1 %v3752_v26  ;;  %3492 = vmatpush3.bf16.msra.mxu0 %v3753_v27 }
 0x689   :  { %3505 = vmatprep.subr.bf16.mxu1 %v3754_v28  ;;  %3533 = vmatprep.subr.bf16.mxu0 %v3755_v30 }
 0x6fa   :  { %v1102_v14 = vpop.f32.mrf.mxu1  ;;  %v1155_v32 = vpop.f32.mrf.mxu0 }
 0x6fb   :  { %v1103_v46 = vadd.f32 %v1102_v14, %v665_v17  ;;  %v1156_v48 = vadd.f32 %v1155_v32, %v673_v36  ;;  %v3760_v32 = vld [vmem:[%s4977_s4 + $0x130] sm:$0xff]  }
 0x6fc   :  { %v1104_v37 = vpop.f32.mrf.mxu1  ;;  %v1157_v15 = vpop.f32.mrf.mxu0 }
 0x6fd   :  { %v1105_v41 = vadd.f32 %v1104_v37, %v669_v33  ;;  %v1158_v42 = vadd.f32 %v1157_v15, %v677_v35  ;;  %v1492_v60 = vmax.f32 %v1103_v46, 0.0  ;;  %v1494_v61 = vmax.f32 %v1156_v48, 0.0 }
 0x6fe   :  { %v1106_v18 = vpop.f32.mrf.mxu1  ;;  %v1159_v40 = vpop.f32.mrf.mxu0 }
 0x6ff   :  { %v1107_v43 = vadd.f32 %v1106_v18, %v665_v17  ;;  %v1160_v45 = vadd.f32 %v1159_v40, %v673_v36  ;;  %v1493_v58 = vmax.f32 %v1105_v41, 0.0  ;;  %v1495_v59 = vmax.f32 %v1158_v42, 0.0 }
 0x700   :  { %v1108_v49 = vpop.f32.mrf.mxu1  ;;  %v1161_v50 = vpop.f32.mrf.mxu0 }
 0x701   :  { %v1109_v52 = vadd.f32 %v1108_v49, %v669_v33  ;;  %v1162_v53 = vadd.f32 %v1161_v50, %v677_v35  ;;  %v1508_v54 = vmax.f32 %v1107_v43, 0.0  ;;  %v1510_v55 = vmax.f32 %v1160_v45, 0.0  ;;  %v3763_v50 = vld [vmem:[%s4977_s4 + $0x1e8] sm:$0xff]  }
 0x702   :  { %v1112_v56 = vpop.f32.mrf.mxu1  ;;  %v1165_v57 = vpop.f32.mrf.mxu0 }
 0x703   :  { %v1509_v4 = vmax.f32 %v1109_v52, 0.0  ;;  %v1511_v3 = vmax.f32 %v1162_v53, 0.0  ;;  %v1556_v7 = vpack.c.bf16 %v1508_v54, %v1492_v60  ;;  %v1558_v1 = vpack.c.bf16 %v1510_v55, %v1494_v61  ;;  %v3764_v55 = vld [vmem:[%s4977_s4 + $0x128] sm:$0xff]  }
 0x704   :  { %v1114_v34 = vpop.f32.mrf.mxu1  ;;  %v1167_v62 = vpop.f32.mrf.mxu0  ;;  %v1113_v25 = vadd.f32 %v1112_v56, %v665_v17  ;;  %v1166_v28 = vadd.f32 %v1165_v57, %v673_v36 }
 0x705   :  { %v1557_v0 = vpack.c.bf16 %v1509_v4, %v1493_v58  ;;  %v1559_v2 = vpack.c.bf16 %v1511_v3, %v1495_v59  ;;  %v1115_v10 = vadd.f32 %v1114_v34, %v669_v33  ;;  %v1168_v19 = vadd.f32 %v1167_v62, %v677_v35  ;;  %v3765_v59 = vld [vmem:[%s4977_s4 + $0x1a8] sm:$0xff]   ;;  %v3766_v4 = vld [vmem:[%s4977_s4 + $0x160] sm:$0xff]  }
 0x706   :  { %v1116_v12 = vpop.f32.mrf.mxu1  ;;  %v1169_v39 = vpop.f32.mrf.mxu0  ;;  %v1524_v46 = vmax.f32 %v1113_v25, 0.0  ;;  %v1526_v52 = vmax.f32 %v1166_v28, 0.0  ;;  %v3767_v34 = vld [vmem:[%s4977_s4 + $0x1e0] sm:$0xff]   ;;  %v3772_v28 = vld [vmem:[%s4977_s4 + $0x118] sm:$0xff]  }
 0x707   :  { %v1117_v23 = vadd.f32 %v1116_v12, %v665_v17  ;;  %v1170_v24 = vadd.f32 %v1169_v39, %v673_v36  ;;  %2648 = vmatprep.mubr.bf16.mxu1 %v1557_v0  ;;  %2697 = vmatprep.mubr.bf16.mxu0 %v1559_v2  ;;  %v1525_v37 = vmax.f32 %v1115_v10, 0.0  ;;  %v4513_v17 = vrot.slane %v4479_v11, %v4166_v47  ;;  %v3762_v36 = vld [vmem:[%s4977_s4 + $0x168] sm:$0xff]   ;;  %v3769_v10 = vld [vmem:[%s4977_s4 + $0x1a0] sm:$0xff]   ;;  %v3770_v12 = vld [vmem:[%s4977_s4 + $0x158] sm:$0xff]  }
 0x708   :  { %v1118_v26 = vpop.f32.mrf.mxu1  ;;  %v1171_v27 = vpop.f32.mrf.mxu0  ;;  %2649 = vmatmul.mubr.bf16.vlgmr.msra.gmra.mxu1 %v1556_v7  ;;  %2698 = vmatmul.mubr.bf16.vlgmr.msra.gmra.mxu0 %v1558_v1  ;;  %v1527_v41 = vmax.f32 %v1168_v19, 0.0 }
 0x709   :  { %v1119_v30 = vadd.f32 %v1118_v26, %v669_v33  ;;  %v1172_v14 = vadd.f32 %v1171_v27, %v677_v35  ;;  %3506 = vmatpush3.bf16.msra.mxu1 %v3756_v6  ;;  %3534 = vmatpush3.bf16.msra.mxu0 %v3757_v31  ;;  %v1540_v15 = vmax.f32 %v1117_v23, 0.0  ;;  %v4517_v33 = vrot.slane %v4479_v11, %v4502_v16  ;;  %v3761_v35 = vld [vmem:[%s4977_s4 + $0x1b0] sm:$0xff]   ;;  %v3768_v31 = vld [vmem:[%s4977_s4 + $0x120] sm:$0xff]   ;;  %v3771_v23 = vld [vmem:[%s4977_s4 + $0x1d8] sm:$0xff]  }
 0x70a   :  { %v4507_v18 = vpop.f32.mrf.mxu1  ;;  %v4509_v40 = vpop.f32.mrf.mxu0  ;;  %3507 = vmatprep.subr.bf16.mxu1 %v3758_v44  ;;  %3535 = vmatprep.subr.bf16.mxu0 %v3759_v13  ;;  %v1542_v42 = vmax.f32 %v1170_v24, 0.0 }
 0x70b   :  { %v1541_v43 = vmax.f32 %v1119_v30, 0.0  ;;  %v1543_v45 = vmax.f32 %v1172_v14, 0.0  ;;  %v1572_v56 = vpack.c.bf16 %v1540_v15, %v1524_v46  ;;  %v3775_v15 = vld [vmem:[%s4977_s4 + $0x1d0] sm:$0xff]  }
 0x70c   :  { %v1210_v48 = vpop.f32.mrf.mxu1  ;;  %v1263_v49 = vpop.f32.mrf.mxu0  ;;  %v1574_v3 = vpack.c.bf16 %v1542_v42, %v1526_v52  ;;  %v3776_v42 = vld [vmem:[%s4977_s4 + $0x110] sm:$0xff]   ;;  %v689_v52 = vrot.slane %v4479_v11, %v4173_v51 }
 0x70d   :  { %v1573_v53 = vpack.c.bf16 %v1541_v43, %v1525_v37  ;;  %v1575_v54 = vpack.c.bf16 %v1543_v45, %v1527_v41  ;;  %3508 = vmatpush3.bf16.msra.mxu1 %v3760_v32  ;;  %3536 = vmatpush3.bf16.msra.mxu0 %v3761_v35  ;;  %v1211_v60 = vadd.f32 %v1210_v48, %v4513_v17  ;;  %v3773_v32 = vld [vmem:[%s4977_s4 + $0x198] sm:$0xff]   ;;  %v3774_v37 = vld [vmem:[%s4977_s4 + $0x150] sm:$0xff]   ;;  %v4581_v35 = vsub.s32 4, %v3968_v5  ;;  %v3778_v5 = vld [vmem:[%s4977_s4 + $0x148] sm:$0xff]  }
 0x70e   :  { %v4531_v57 = vpop.f32.mrf.mxu1  ;;  %v4533_v58 = vpop.f32.mrf.mxu0  ;;  %3509 = vmatprep.subr.bf16.mxu1 %v3762_v36  ;;  %v1264_v61 = vadd.f32 %v1263_v49, %v4517_v33  ;;  %3537 = vmatprep.subr.bf16.mxu0 %v3763_v50  ;;  %v3777_v46 = vld [vmem:[%s4977_s4 + $0x190] sm:$0xff]   ;;  %v3779_v48 = vld [vmem:[%s4977_s4 + $0x1c8] sm:$0xff]  }
 0x70f   :  { %2656 = vmatprep.mubr.bf16.mxu1 %v1573_v53  ;;  %2705 = vmatprep.mubr.bf16.mxu0 %v1575_v54  ;;  %v1497_v39 = vmax.f32 %v1211_v60, 0.0  ;;  %v681_v49 = vrot.slane %v4479_v11, %v4581_v35  ;;  %v3780_v54 = vld [vmem:[%s4977_s4 + $0x108] sm:$0xff]   ;;  %v1266_v11 = vadd.f32 %v4533_v58, %v689_v52  ;;  %v3784_v58 = vld [vmem:[%s4977_s4 + $0x100] sm:$0xff]  }
 0x710   :  { %v1214_v62 = vpop.f32.mrf.mxu1  ;;  %v1267_v0 = vpop.f32.mrf.mxu0  ;;  %2657 = vmatmul.mubr.bf16.gmra.mxu1 %v1572_v56  ;;  %2706 = vmatmul.mubr.bf16.gmra.mxu0 %v1574_v3  ;;  %v1499_v44 = vmax.f32 %v1264_v61, 0.0  ;;  %v3781_v56 = vld [vmem:[%s4977_s4 + $0x188] sm:$0xff]   ;;  %v3783_v3 = vld [vmem:[%s4977_s4 + $0x1c0] sm:$0xff]  }
 0x711   :  { %v1215_v2 = vadd.f32 %v1214_v62, %v4513_v17  ;;  %v1268_v6 = vadd.f32 %v1267_v0, %v4517_v33  ;;  %3510 = vmatpush3.bf16.msra.mxu1 %v3764_v55  ;;  %3538 = vmatpush3.bf16.msra.mxu0 %v3765_v59  ;;  %v1213_v55 = vadd.f32 %v4531_v57, %v681_v49  ;;  %v3782_v59 = vld [vmem:[%s4977_s4 + $0x140] sm:$0xff]  }
 0x712   :  { %v4551_v7 = vpop.f32.mrf.mxu1  ;;  %v4553_v1 = vpop.f32.mrf.mxu0  ;;  %3511 = vmatprep.subr.bf16.mxu1 %v3766_v4  ;;  %3539 = vmatprep.subr.bf16.mxu0 %v3767_v34  ;;  %v1209_v57 = vadd.f32 %v4507_v18, %v681_v49  ;;  %v1262_v34 = vadd.f32 %v4509_v40, %v689_v52  ;;  %v3785_v18 = vld [vmem:[%s4977_s4 + $0x180] sm:$0xff]   ;;  %v3786_v40 = vld [vmem:[%s4977_s4 + $0x278] sm:$0xff]  }
 0x713   :  { %v1513_v13 = vmax.f32 %v1215_v2, 0.0  ;;  %v1515_v19 = vmax.f32 %v1268_v6, 0.0  ;;  %v1512_v2 = vmax.f32 %v1213_v55, 0.0 }
 0x714   :  { %v1220_v24 = vpop.f32.mrf.mxu1  ;;  %v1273_v25 = vpop.f32.mrf.mxu0 }
 0x715   :  { %v1561_v26 = vpack.c.bf16 %v1513_v13, %v1497_v39  ;;  %v1563_v27 = vpack.c.bf16 %v1515_v19, %v1499_v44  ;;  %3512 = vmatpush3.bf16.msra.mxu1 %v3768_v31  ;;  %3540 = vmatpush3.bf16.msra.mxu0 %v3769_v10  ;;  %v1221_v62 = vadd.f32 %v1220_v24, %v4513_v17  ;;  %v3787_v10 = vld [vmem:[%s4977_s4 + $0x2f8] sm:$0xff]   ;;  %v1498_v13 = vmax.f32 %v1262_v34, 0.0 }
 0x716   :  { %v4567_v30 = vpop.f32.mrf.mxu1  ;;  %v4569_v14 = vpop.f32.mrf.mxu0  ;;  %3513 = vmatprep.subr.bf16.mxu1 %v3770_v12  ;;  %3541 = vmatprep.subr.bf16.mxu0 %v3771_v23  ;;  %v1274_v6 = vadd.f32 %v1273_v25, %v4517_v33  ;;  %v1496_v12 = vmax.f32 %v1209_v57, 0.0 }
 0x717   :  { %2746 = vmatprep.mubr.bf16.mxu1 %v1561_v26  ;;  %2795 = vmatprep.mubr.bf16.mxu0 %v1563_v27  ;;  %v1529_v19 = vmax.f32 %v1221_v62, 0.0  ;;  %v1223_v27 = vadd.f32 %v4567_v30, %v681_v49  ;;  %v3789_v30 = vld [vmem:[%s4977_s4 + $0x2b8] sm:$0xff]  }
 0x718   :  { %v1224_v36 = vpop.f32.mrf.mxu1  ;;  %v1277_v41 = vpop.f32.mrf.mxu0  ;;  %v1560_v25 = vpack.c.bf16 %v1512_v2, %v1496_v12  ;;  %v1531_v26 = vmax.f32 %v1274_v6, 0.0  ;;  %v3796_v6 = vld [vmem:[%s4977_s4 + $0x228] sm:$0xff]   ;;  %v3799_v12 = vld [vmem:[%s4977_s4 + $0x2e0] sm:$0xff]  }
 0x719   :  { %3514 = vmatpush3.bf16.msra.mxu1 %v3772_v28  ;;  %3542 = vmatpush3.bf16.msra.mxu0 %v3773_v32  ;;  %v1225_v4 = vadd.f32 %v1224_v36, %v4513_v17  ;;  %v1278_v60 = vadd.f32 %v1277_v41, %v4517_v33  ;;  %v1514_v17 = vmax.f32 %v1266_v11, 0.0  ;;  %v4644_v33 = vld [vmem:[%s4978_s5 + $0x8] sm:$0xff]  ;;  %v3788_v32 = vld [vmem:[%s4977_s4 + $0x238] sm:$0xff]  }
 0x71a   :  { %v4586_v43 = vpop.f32.mrf.mxu1  ;;  %v4588_v45 = vpop.f32.mrf.mxu0  ;;  %3515 = vmatprep.subr.bf16.mxu1 %v3774_v37  ;;  %3543 = vmatprep.subr.bf16.mxu0 %v3775_v15  ;;  %v4648_v23 = vrot.slane %v4644_v33, %v3977_v8  ;;  %v4653_v28 = vrot.slane %v4644_v33, %v4073_v9  ;;  %v1276_v15 = vadd.f32 %v4569_v14, %v689_v52  ;;  %v3790_v9 = vld [vmem:[%s4977_s4 + $0x270] sm:$0xff]  }
 0x71b   :  { %v1545_v31 = vmax.f32 %v1225_v4, 0.0  ;;  %v1547_v39 = vmax.f32 %v1278_v60, 0.0  ;;  %v1562_v37 = vpack.c.bf16 %v1514_v17, %v1498_v13  ;;  %v3791_v14 = vld [vmem:[%s4977_s4 + $0x2f0] sm:$0xff]   ;;  %v3797_v17 = vld [vmem:[%s4977_s4 + $0x2a8] sm:$0xff]   ;;  %v3800_v13 = vld [vmem:[%s4977_s4 + $0x220] sm:$0xff]  }
 0x71c   :  { %v1316_v50 = vpop.f32.mrf.mxu1  ;;  %v4603_v53 = vpop.f32.mrf.mxu0  ;;  %v1546_v11 = vmax.f32 %v1276_v15, 0.0  ;;  %v3806_v15 = vld [vmem:[%s4977_s4 + $0x250] sm:$0xff]  }
 0x71d   :  { %3516 = vmatpush3.bf16.msra.mxu1 %v3776_v42  ;;  %3544 = vmatpush3.bf16.msra.mxu0 %v3777_v46  ;;  %v1577_v36 = vpack.c.bf16 %v1545_v31, %v1529_v19  ;;  %v1219_v42 = vadd.f32 %v4551_v7, %v681_v49  ;;  %v1579_v46 = vpack.c.bf16 %v1547_v39, %v1531_v26  ;;  %v3798_v31 = vld [vmem:[%s4977_s4 + $0x260] sm:$0xff]  }
 0x71e   :  { %3517 = vmatprep.subr.bf16.mxu1 %v3778_v5  ;;  %3545 = vmatprep.subr.bf16.mxu0 %v3779_v48  ;;  %v4622_v61 = vpop.f32.mrf.mxu1  ;;  %v4626_v0 = vpop.f32.mrf.mxu0  ;;  %v1272_v48 = vadd.f32 %v4553_v1, %v689_v52  ;;  %v1370_v7 = vadd.f32 %v4603_v53, %v4653_v28  ;;  %v3794_v52 = vld [vmem:[%s4977_s4 + $0x268] sm:$0xff]   ;;  %v3801_v19 = vld [vmem:[%s4977_s4 + $0x2a0] sm:$0xff]  }
 0x71f   :  { %v1528_v53 = vmax.f32 %v1219_v42, 0.0  ;;  %v3809_v42 = vld [vmem:[%s4977_s4 + $0x290] sm:$0xff]  }
 0x720   :  { %v1320_v44 = vpop.f32.mrf.mxu1  ;;  %v1373_v24 = vpop.f32.mrf.mxu0  ;;  %v1530_v57 = vmax.f32 %v1272_v48, 0.0 }
 0x721   :  { %3518 = vmatpush3.bf16.msra.mxu1 %v3780_v54  ;;  %3546 = vmatpush3.bf16.msra.mxu0 %v3781_v56  ;;  %v1321_v41 = vadd.f32 %v1320_v44, %v4648_v23  ;;  %v1374_v5 = vadd.f32 %v1373_v24, %v4653_v28  ;;  %v1317_v54 = vadd.f32 %v1316_v50, %v4648_v23  ;;  %v1544_v56 = vmax.f32 %v1223_v27, 0.0  ;;  %v3793_v50 = vld [vmem:[%s4977_s4 + $0x2b0] sm:$0xff]   ;;  %v3802_v24 = vld [vmem:[%s4977_s4 + $0x258] sm:$0xff]  }
 0x722   :  { %3519 = vmatprep.subr.bf16.mxu1 %v3782_v59  ;;  %3547 = vmatprep.subr.bf16.mxu0 %v3783_v3  ;;  %v4673_v55 = vpop.f32.mrf.mxu1  ;;  %v4677_v49 = vpop.f32.mrf.mxu0  ;;  %v3792_v59 = vld [vmem:[%s4977_s4 + $0x230] sm:$0xff]   ;;  %v3795_v3 = vld [vmem:[%s4977_s4 + $0x2e8] sm:$0xff]  }
 0x723   :  { %v1517_v1 = vmax.f32 %v1321_v41, 0.0  ;;  %v1519_v4 = vmax.f32 %v1374_v5, 0.0  ;;  %v1501_v60 = vmax.f32 %v1317_v54, 0.0  ;;  %v1576_v62 = vpack.c.bf16 %v1544_v56, %v1528_v53  ;;  %v3811_v5 = vld [vmem:[%s4977_s4 + $0x2c8] sm:$0xff]   ;;  %v3815_v53 = vld [vmem:[%s4977_s4 + $0x2c0] sm:$0xff]  }
 0x724   :  { %v4691_v34 = vpop.f32.mrf.mxu1  ;;  %v4693_v2 = vpop.f32.mrf.mxu0  ;;  %v705_v54 = vrot.slane %v4644_v33, %v4027_v21 }
 0x725   :  { %3520 = vmatpush3.bf16.msra.mxu1 %v3784_v58  ;;  %3548 = vmatpush3.bf16.msra.mxu0 %v3785_v18  ;;  %v1503_v58 = vmax.f32 %v1370_v7, 0.0  ;;  %v1578_v18 = vpack.c.bf16 %v1546_v11, %v1530_v57  ;;  %v3812_v7 = vld [vmem:[%s4977_s4 + $0x208] sm:$0xff]  }
 0x726   :  { %3561 = vmatprep.subr.bf16.mxu1 %v3786_v40  ;;  %3589 = vmatprep.subr.bf16.mxu0 %v3787_v10  ;;  %v1565_v40 = vpack.c.bf16 %v1517_v1, %v1501_v60  ;;  %v4707_v39 = vpop.f32.mrf.mxu1  ;;  %v4709_v44 = vpop.f32.mrf.mxu0  ;;  %v3813_v11 = vld [vmem:[%s4977_s4 + $0x288] sm:$0xff]   ;;  %v3814_v1 = vld [vmem:[%s4977_s4 + $0x240] sm:$0xff]   ;;  %v1368_v57 = vadd.f32 %v4588_v45, %v705_v54  ;;  %v1327_v60 = vadd.f32 %v4691_v34, %v4648_v23 }
 0x727   :  { %v1567_v10 = vpack.c.bf16 %v1519_v4, %v1503_v58  ;;  %v3817_v45 = vld [vmem:[%s4977_s4 + $0x280] sm:$0xff]  }
 0x728   :  { %2747 = vmatmul.mubr.bf16.vlgmr.msra.gmra.mxu1 %v1560_v25  ;;  %2796 = vmatmul.mubr.bf16.vlgmr.msra.gmra.mxu0 %v1562_v37  ;;  %v3803_v25 = vld [vmem:[%s4977_s4 + $0x2d8] sm:$0xff]   ;;  %v1330_v26 = vpop.f32.mrf.mxu1  ;;  %v1383_v27 = vpop.f32.mrf.mxu0 }
 0x729   :  { %2754 = vmatprep.mubr.bf16.mxu1 %v1577_v36  ;;  %2803 = vmatprep.mubr.bf16.mxu0 %v1579_v46  ;;  %v3805_v37 = vld [vmem:[%s4977_s4 + $0x298] sm:$0xff]   ;;  %v3807_v36 = vld [vmem:[%s4977_s4 + $0x2d0] sm:$0xff]   ;;  %v3810_v46 = vld [vmem:[%s4977_s4 + $0x248] sm:$0xff]   ;;  %v1384_v4 = vadd.f32 %v1383_v27, %v4653_v28 }
 0x72a   :  { %3562 = vmatpush3.bf16.msra.mxu1 %v3788_v32  ;;  %3590 = vmatpush3.bf16.msra.mxu0 %v3789_v30  ;;  %v3804_v32 = vld [vmem:[%s4977_s4 + $0x218] sm:$0xff]   ;;  %v4735_v41 = vpop.f32.mrf.mxu1  ;;  %v4737_v30 = vpop.f32.mrf.mxu0 }
 0x72b   :  { %3563 = vmatprep.subr.bf16.mxu1 %v3790_v9  ;;  %3591 = vmatprep.subr.bf16.mxu0 %v3791_v14  ;;  %v3808_v9 = vld [vmem:[%s4977_s4 + $0x210] sm:$0xff]   ;;  %v697_v14 = vrot.slane %v4644_v33, %v4024_v20 }
 0x72c   :  { %v1422_v48 = vpop.f32.mrf.mxu1  ;;  %v1475_v56 = vpop.f32.mrf.mxu0 }
 0x72e   :  { %3564 = vmatpush3.bf16.msra.mxu1 %v3792_v59  ;;  %3592 = vmatpush3.bf16.msra.mxu0 %v3793_v50  ;;  %v1319_v59 = vadd.f32 %v4622_v61, %v697_v14  ;;  %v1372_v50 = vadd.f32 %v4626_v0, %v705_v54  ;;  %v1315_v61 = vadd.f32 %v4586_v43, %v697_v14  ;;  %v3816_v0 = vld [vmem:[%s4977_s4 + $0x200] sm:$0xff]  }
 0x72f   :  { %3565 = vmatprep.subr.bf16.mxu1 %v3794_v52  ;;  %3593 = vmatprep.subr.bf16.mxu0 %v3795_v3  ;;  %v1331_v52 = vadd.f32 %v1330_v26, %v4648_v23  ;;  %v4772_v3 = vpop.f32.mrf.mxu1  ;;  %v1380_v43 = vadd.f32 %v4693_v2, %v4653_v28  ;;  %v3818_v23 = vld [vmem:[%s4977_s4 + $0x378] sm:$0xff]   ;;  %v1502_v2 = vmax.f32 %v1368_v57, 0.0 }
 0x730   :  { %2755 = vmatmul.mubr.bf16.gmra.mxu1 %v1576_v62  ;;  %2804 = vmatmul.mubr.bf16.gmra.mxu0 %v1578_v18  ;;  %v4777_v62 = vpop.f32.mrf.mxu0  ;;  %v1516_v58 = vmax.f32 %v1319_v59, 0.0  ;;  %v1518_v34 = vmax.f32 %v1372_v50, 0.0  ;;  %v3819_v18 = vld [vmem:[%s4977_s4 + $0x3f8] sm:$0xff]  }
 0x731   :  { %2844 = vmatprep.mubr.bf16.mxu1 %v1565_v40  ;;  %2893 = vmatprep.mubr.bf16.mxu0 %v1567_v10  ;;  %v1500_v40 = vmax.f32 %v1315_v61, 0.0  ;;  %v1426_v28 = vpop.f32.mrf.mxu1  ;;  %v4795_v10 = vrot.slane %v4644_v33, %v4166_v47  ;;  %v3820_v26 = vld [vmem:[%s4977_s4 + $0x338] sm:$0xff]   ;;  %v1382_v47 = vadd.f32 %v4709_v44, %v705_v54  ;;  %v3823_v44 = vld [vmem:[%s4977_s4 + $0x3f0] sm:$0xff]  }
 0x732   :  { %3566 = vmatpush3.bf16.msra.mxu1 %v3796_v6  ;;  %3594 = vmatpush3.bf16.msra.mxu0 %v3797_v17  ;;  %v1549_v6 = vmax.f32 %v1331_v52, 0.0  ;;  %v1551_v17 = vmax.f32 %v1384_v4, 0.0  ;;  %v1566_v27 = vpack.c.bf16 %v1518_v34, %v1502_v2  ;;  %v3828_v4 = vld [vmem:[%s4977_s4 + $0x328] sm:$0xff]  }
 0x733   :  { %3567 = vmatprep.subr.bf16.mxu1 %v3798_v31  ;;  %3595 = vmatprep.subr.bf16.mxu0 %v3799_v12  ;;  %v1533_v31 = vmax.f32 %v1327_v60, 0.0  ;;  %v1479_v12 = vpop.f32.mrf.mxu0 }
 0x735   :  { %v4847_v34 = vpop.f32.mrf.mxu0 }
 0x736   :  { %3568 = vmatpush3.bf16.msra.mxu1 %v3800_v13  ;;  %3596 = vmatpush3.bf16.msra.mxu0 %v3801_v19  ;;  %v1564_v13 = vpack.c.bf16 %v1516_v58, %v1500_v40  ;;  %v1535_v19 = vmax.f32 %v1380_v43, 0.0  ;;  %v3830_v58 = vld [vmem:[%s4977_s4 + $0x360] sm:$0xff]   ;;  %v3834_v40 = vld [vmem:[%s4977_s4 + $0x358] sm:$0xff]  }
 0x737   :  { %3569 = vmatprep.subr.bf16.mxu1 %v3802_v24  ;;  %3597 = vmatprep.subr.bf16.mxu0 %v3803_v25  ;;  %v1329_v24 = vadd.f32 %v4707_v39, %v697_v14  ;;  %v4800_v25 = vrot.slane %v4644_v33, %v4502_v16  ;;  %v3821_v39 = vld [vmem:[%s4977_s4 + $0x3b8] sm:$0xff]   ;;  %v1485_v2 = vpop.f32.mrf.mxu0 }
 0x739   :  { %v1476_v59 = vadd.f32 %v1475_v56, %v4800_v25 }
 0x73a   :  { %3570 = vmatpush3.bf16.msra.mxu1 %v3804_v32  ;;  %3598 = vmatpush3.bf16.msra.mxu0 %v3805_v37  ;;  %v1581_v32 = vpack.c.bf16 %v1549_v6, %v1533_v31  ;;  %v1427_v37 = vadd.f32 %v1426_v28, %v4795_v10  ;;  %v3832_v6 = vld [vmem:[%s4977_s4 + $0x320] sm:$0xff]   ;;  %v3836_v31 = vld [vmem:[%s4977_s4 + $0x318] sm:$0xff]  }
 0x73b   :  { %3571 = vmatprep.subr.bf16.mxu1 %v3806_v15  ;;  %3599 = vmatprep.subr.bf16.mxu0 %v3807_v36  ;;  %v3822_v15 = vld [vmem:[%s4977_s4 + $0x370] sm:$0xff]   ;;  %v1325_v36 = vadd.f32 %v4673_v55, %v697_v14  ;;  %v1550_v14 = vmax.f32 %v1382_v47, 0.0  ;;  %v1507_v61 = vmax.f32 %v1476_v59, 0.0 }
 0x73c   :  { %v3824_v55 = vld [vmem:[%s4977_s4 + $0x330] sm:$0xff]  }
 0x73d   :  { %v3841_v47 = vld [vmem:[%s4977_s4 + $0x390] sm:$0xff]  }
 0x73e   :  { %3572 = vmatpush3.bf16.msra.mxu1 %v3808_v9  ;;  %3600 = vmatpush3.bf16.msra.mxu0 %v3809_v42  ;;  %v1583_v9 = vpack.c.bf16 %v1551_v17, %v1535_v19  ;;  %v1480_v42 = vadd.f32 %v1479_v12, %v4800_v25  ;;  %v3835_v17 = vld [vmem:[%s4977_s4 + $0x3d8] sm:$0xff]   ;;  %v3839_v19 = vld [vmem:[%s4977_s4 + $0x3d0] sm:$0xff]  }
 0x73f   :  { %3573 = vmatprep.subr.bf16.mxu1 %v3810_v46  ;;  %3601 = vmatprep.subr.bf16.mxu0 %v3811_v5  ;;  %v1378_v46 = vadd.f32 %v4677_v49, %v705_v54  ;;  %v1423_v5 = vadd.f32 %v1422_v48, %v4795_v10  ;;  %v3825_v49 = vld [vmem:[%s4977_s4 + $0x3b0] sm:$0xff]   ;;  %v3826_v48 = vld [vmem:[%s4977_s4 + $0x368] sm:$0xff]   ;;  %v1532_v54 = vmax.f32 %v1325_v36, 0.0  ;;  %v3837_v12 = vld [vmem:[%s4977_s4 + $0x398] sm:$0xff]   ;;  %v721_v36 = vrot.slane %v4644_v33, %v4173_v51 }
 0x740   :  { %v1523_v56 = vmax.f32 %v1480_v42, 0.0  ;;  %v3844_v42 = vld [vmem:[%s4977_s4 + $0x308] sm:$0xff]  }
 0x741   :  { %v1534_v50 = vmax.f32 %v1378_v46, 0.0  ;;  %v1505_v52 = vmax.f32 %v1423_v5, 0.0  ;;  %v3845_v46 = vld [vmem:[%s4977_s4 + $0x388] sm:$0xff]   ;;  %v3846_v5 = vld [vmem:[%s4977_s4 + $0x340] sm:$0xff]   ;;  %v1478_v51 = vadd.f32 %v4777_v62, %v721_v36 }
 0x742   :  { %3574 = vmatpush3.bf16.msra.mxu1 %v3812_v7  ;;  %3602 = vmatpush3.bf16.msra.mxu0 %v3813_v11  ;;  %v1548_v7 = vmax.f32 %v1329_v24, 0.0  ;;  %v1521_v11 = vmax.f32 %v1427_v37, 0.0  ;;  %v1571_v43 = vpack.c.bf16 %v1523_v56, %v1507_v61  ;;  %v3843_v37 = vld [vmem:[%s4977_s4 + $0x3c8] sm:$0xff]   ;;  %v3848_v62 = vld [vmem:[%s4977_s4 + $0x300] sm:$0xff]  }
 0x743   :  { %3575 = vmatprep.subr.bf16.mxu1 %v3814_v1  ;;  %3603 = vmatprep.subr.bf16.mxu0 %v3815_v53  ;;  %v3827_v1 = vld [vmem:[%s4977_s4 + $0x3e8] sm:$0xff]   ;;  %v1582_v57 = vpack.c.bf16 %v1550_v14, %v1534_v50 }
 0x744   :  { %v1580_v53 = vpack.c.bf16 %v1548_v7, %v1532_v54  ;;  %v1569_v60 = vpack.c.bf16 %v1521_v11, %v1505_v52  ;;  %v3847_v7 = vld [vmem:[%s4977_s4 + $0x3c0] sm:$0xff]  }
 0x746   :  { %3576 = vmatpush3.bf16.msra.mxu1 %v3816_v0  ;;  %3604 = vmatpush3.bf16.msra.mxu0 %v3817_v45  ;;  %v3829_v0 = vld [vmem:[%s4977_s4 + $0x3a8] sm:$0xff]   ;;  %v3831_v45 = vld [vmem:[%s4977_s4 + $0x3e0] sm:$0xff]  }
 0x747   :  { %3617 = vmatprep.subr.bf16.mxu1 %v3818_v23  ;;  %3645 = vmatprep.subr.bf16.mxu0 %v3819_v18  ;;  %v4845_v23 = vpop.f32.mrf.mxu1  ;;  %v3833_v18 = vld [vmem:[%s4977_s4 + $0x3a0] sm:$0xff]  }
 0x749   :  { %2845 = vmatmul.mubr.bf16.vlgmr.msra.gmra.mxu1 %v1564_v13  ;;  %2894 = vmatmul.mubr.bf16.vlgmr.msra.gmra.mxu0 %v1566_v27  ;;  %v1432_v28 = vpop.f32.mrf.mxu1  ;;  %v3838_v13 = vld [vmem:[%s4977_s4 + $0x350] sm:$0xff]  }
 0x74a   :  { %2852 = vmatprep.mubr.bf16.mxu1 %v1581_v32  ;;  %2901 = vmatprep.mubr.bf16.mxu0 %v1583_v9  ;;  %v3840_v27 = vld [vmem:[%s4977_s4 + $0x310] sm:$0xff]   ;;  %v3842_v32 = vld [vmem:[%s4977_s4 + $0x348] sm:$0xff]   ;;  %v1433_v14 = vadd.f32 %v1432_v28, %v4795_v10 }
 0x74b   :  { %3618 = vmatpush3.bf16.msra.mxu1 %v3820_v26  ;;  %3646 = vmatpush3.bf16.msra.mxu0 %v3821_v39  ;;  %v1434_v24 = vpop.f32.mrf.mxu1  ;;  %v1487_v26 = vpop.f32.mrf.mxu0  ;;  %v713_v39 = vrot.slane %v4644_v33, %v4581_v35 }
 0x74c   :  { %3619 = vmatprep.subr.bf16.mxu1 %v3822_v15  ;;  %3647 = vmatprep.subr.bf16.mxu0 %v3823_v44 }
 0x74d   :  { %v1436_v15 = vpop.f32.mrf.mxu1  ;;  %v1489_v9 = vpop.f32.mrf.mxu0  ;;  %v1425_v44 = vadd.f32 %v4772_v3, %v713_v39  ;;  %v1421_v3 = vadd.f32 %v4735_v41, %v713_v39  ;;  %v3849_v41 = vld [vmem:[%s4977_s4 + $0x380] sm:$0xff]  }
 0x74e   :  { %v1437_v33 = vadd.f32 %v1436_v15, %v4795_v10  ;;  %v1490_v59 = vadd.f32 %v1489_v9, %v4800_v25 }
 0x74f   :  { %3620 = vmatpush3.bf16.msra.mxu1 %v3824_v55  ;;  %3648 = vmatpush3.bf16.msra.mxu0 %v3825_v49  ;;  %v1474_v55 = vadd.f32 %v4737_v30, %v721_v36  ;;  %v1520_v11 = vmax.f32 %v1425_v44, 0.0  ;;  %v1486_v49 = vadd.f32 %v1485_v2, %v4800_v25  ;;  %v1504_v30 = vmax.f32 %v1421_v3, 0.0 }
 0x750   :  { %3621 = vmatprep.subr.bf16.mxu1 %v3826_v48  ;;  %3649 = vmatprep.subr.bf16.mxu0 %v3827_v1  ;;  %v1522_v48 = vmax.f32 %v1478_v51, 0.0  ;;  %v1553_v54 = vmax.f32 %v1437_v33, 0.0  ;;  %v1555_v56 = vmax.f32 %v1490_v59, 0.0  ;;  %v1537_v1 = vmax.f32 %v1433_v14, 0.0 }
 0x751   :  { %2853 = vmatmul.mubr.bf16.gmra.mxu1 %v1580_v53  ;;  %2902 = vmatmul.mubr.bf16.gmra.mxu0 %v1582_v57  ;;  %v1506_v10 = vmax.f32 %v1474_v55, 0.0  ;;  %v1568_v50 = vpack.c.bf16 %v1520_v11, %v1504_v30  ;;  %v1539_v52 = vmax.f32 %v1486_v49, 0.0  ;;  %v1435_v53 = vadd.f32 %v1434_v24, %v713_v39 }
 0x752   :  { %2942 = vmatprep.mubr.bf16.mxu1 %v1569_v60  ;;  %2991 = vmatprep.mubr.bf16.mxu0 %v1571_v43  ;;  %v1488_v25 = vadd.f32 %v1487_v26, %v721_v36  ;;  %v1431_v57 = vadd.f32 %v4845_v23, %v713_v39 }
 0x753   :  { %3622 = vmatpush3.bf16.msra.mxu1 %v3828_v4  ;;  %3650 = vmatpush3.bf16.msra.mxu0 %v3829_v0  ;;  %v1570_v61 = vpack.c.bf16 %v1522_v48, %v1506_v10  ;;  %v1585_v4 = vpack.c.bf16 %v1553_v54, %v1537_v1  ;;  %v1587_v60 = vpack.c.bf16 %v1555_v56, %v1539_v52  ;;  %v4926_v1 = vld [vmem:[%s4979_s6] sm:$0xff] }
 0x754   :  { %3623 = vmatprep.subr.bf16.mxu1 %v3830_v58  ;;  %3651 = vmatprep.subr.bf16.mxu0 %v3831_v45  ;;  %v1484_v0 = vadd.f32 %v4847_v34, %v721_v36  ;;  %v1552_v58 = vmax.f32 %v1435_v53, 0.0  ;;  %v1554_v43 = vmax.f32 %v1488_v25, 0.0  ;;  %v1536_v45 = vmax.f32 %v1431_v57, 0.0  ;;  %4992 = vst [vmem:[#allocation10_spill] sm:$0xff] %v4926_v1 }
 0x757   :  { %3624 = vmatpush3.bf16.msra.mxu1 %v3832_v6  ;;  %3652 = vmatpush3.bf16.msra.mxu0 %v3833_v18  ;;  %v1538_v6 = vmax.f32 %v1484_v0, 0.0  ;;  %v1584_v18 = vpack.c.bf16 %v1552_v58, %v1536_v45 }
 0x758   :  { %3625 = vmatprep.subr.bf16.mxu1 %v3834_v40  ;;  %3653 = vmatprep.subr.bf16.mxu0 %v3835_v17 }
 0x759   :  { %v1586_v40 = vpack.c.bf16 %v1554_v43, %v1538_v6 }
 0x75b   :  { %3626 = vmatpush3.bf16.msra.mxu1 %v3836_v31  ;;  %3654 = vmatpush3.bf16.msra.mxu0 %v3837_v12 }
 0x75c   :  { %3627 = vmatprep.subr.bf16.mxu1 %v3838_v13  ;;  %3655 = vmatprep.subr.bf16.mxu0 %v3839_v19 }
 0x75f   :  { %3628 = vmatpush3.bf16.msra.mxu1 %v3840_v27  ;;  %3656 = vmatpush3.bf16.msra.mxu0 %v3841_v47 }
 0x760   :  { %3629 = vmatprep.subr.bf16.mxu1 %v3842_v32  ;;  %3657 = vmatprep.subr.bf16.mxu0 %v3843_v37 }
 0x763   :  { %3630 = vmatpush3.bf16.msra.mxu1 %v3844_v42  ;;  %3658 = vmatpush3.bf16.msra.mxu0 %v3845_v46 }
 0x764   :  { %3631 = vmatprep.subr.bf16.mxu1 %v3846_v5  ;;  %3659 = vmatprep.subr.bf16.mxu0 %v3847_v7 }
 0x767   :  { %3632 = vmatpush3.bf16.msra.mxu1 %v3848_v62  ;;  %3660 = vmatpush3.bf16.msra.mxu0 %v3849_v41 }
 0x76a   :  { %2943 = vmatmul.mubr.bf16.vlgmr.msra.gmra.mxu1 %v1568_v50  ;;  %2992 = vmatmul.mubr.bf16.vlgmr.msra.gmra.mxu0 %v1570_v61  ;;  %v1847_v50 = vrot.slane %v4926_v1, %v4581_v35 }
 0x76b   :  { %2950 = vmatprep.mubr.bf16.mxu1 %v1585_v4  ;;  %2999 = vmatprep.mubr.bf16.mxu0 %v1587_v60 }
 0x772   :  { %2951 = vmatmul.mubr.bf16.gmra.mxu1 %v1584_v18  ;;  %3000 = vmatmul.mubr.bf16.gmra.mxu0 %v1586_v40 }
 0x7c8   :  { %v3465_v17 = vpop.f32.mrf.mxu1  ;;  %v3493_v28 = vpop.f32.mrf.mxu0 }
 0x7ca   :  { %v3466_v2 = vpop.f32.mrf.mxu1  ;;  %v3494_v31 = vpop.f32.mrf.mxu0 }
 0x7cb   :  { %v3467_v52 = vadd.f32 %v3466_v2, %v3465_v17  ;;  %v3495_v60 = vadd.f32 %v3494_v31, %v3493_v28 }
 0x7cc   :  { %v3468_v23 = vpop.f32.mrf.mxu1  ;;  %v3496_v12 = vpop.f32.mrf.mxu0 }
 0x7cd   :  { %v2651_v25 = vadd.f32 %v3467_v52, %v1847_v50 }
 0x7ce   :  { %v3469_v13 = vpop.f32.mrf.mxu1  ;;  %v3497_v19 = vpop.f32.mrf.mxu0 }
 0x7cf   :  { %v3470_v4 = vadd.f32 %v3469_v13, %v3468_v23  ;;  %v2700_v45 = vadd.f32 %v3495_v60, %v2651_v25  ;;  %v3498_v40 = vadd.f32 %v3497_v19, %v3496_v12 }
 0x7d0   :  { %v3471_v34 = vpop.f32.mrf.mxu1  ;;  %v3499_v24 = vpop.f32.mrf.mxu0 }
 0x7d1   :  { %v2654_v6 = vadd.f32 %v3470_v4, %v1847_v50 }
 0x7d2   :  { %v3472_v26 = vpop.f32.mrf.mxu1  ;;  %v3500_v27 = vpop.f32.mrf.mxu0 }
 0x7d3   :  { %v3473_v58 = vadd.f32 %v3472_v26, %v3471_v34  ;;  %v2703_v22 = vadd.f32 %v3498_v40, %v2654_v6  ;;  %v3501_v52 = vadd.f32 %v3500_v27, %v3499_v24 }
 0x7d4   :  { %v3474_v47 = vpop.f32.mrf.mxu1  ;;  %v4917_v32 = vpop.f32.mrf.mxu0 }
 0x7d5   :  { %v2659_v20 = vadd.f32 %v3473_v58, %v1847_v50 }
 0x7d6   :  { %v3475_v37 = vpop.f32.mrf.mxu1  ;;  %v3503_v39 = vpop.f32.mrf.mxu0 }
 0x7d7   :  { %v3476_v35 = vadd.f32 %v3475_v37, %v3474_v47  ;;  %v2708_v31 = vadd.f32 %v3501_v52, %v2659_v20 }
 0x7d9   :  { %v2662_v26 = vadd.f32 %v3476_v35, %v1847_v50 }
 0x7e8   :  { %v3521_v15 = vpop.f32.mrf.mxu1  ;;  %v3549_v36 = vpop.f32.mrf.mxu0 }
 0x7ea   :  { %v3522_v9 = vpop.f32.mrf.mxu1  ;;  %v3550_v42 = vpop.f32.mrf.mxu0 }
 0x7eb   :  { %v3523_v0 = vadd.f32 %v3522_v9, %v3521_v15  ;;  %v3551_v17 = vadd.f32 %v3550_v42, %v3549_v36 }
 0x7ec   :  { %v3524_v44 = vpop.f32.mrf.mxu1  ;;  %v3552_v46 = vpop.f32.mrf.mxu0 }
 0x7ed   :  { %v2749_v21 = vadd.f32 %v3523_v0, %v2700_v45 }
 0x7ee   :  { %v3525_v5 = vpop.f32.mrf.mxu1  ;;  %v3553_v51 = vpop.f32.mrf.mxu0 }
 0x7ef   :  { %v3526_v8 = vadd.f32 %v3525_v5, %v3524_v44  ;;  %v2798_v13 = vadd.f32 %v3551_v17, %v2749_v21  ;;  %v3554_v15 = vadd.f32 %v3553_v51, %v3552_v46  ;;  %v3504_v5 = vadd.f32 %v3503_v39, %v4917_v32 }
 0x7f0   :  { %v3527_v33 = vpop.f32.mrf.mxu1  ;;  %v3555_v7 = vpop.f32.mrf.mxu0 }
 0x7f1   :  { %v2752_v28 = vadd.f32 %v3526_v8, %v2703_v22  ;;  %v2711_v21 = vadd.f32 %v3504_v5, %v2662_v26 }
 0x7f2   :  { %v3528_v3 = vpop.f32.mrf.mxu1  ;;  %v3556_v59 = vpop.f32.mrf.mxu0 }
 0x7f3   :  { %v3529_v23 = vadd.f32 %v3528_v3, %v3527_v33  ;;  %v2801_v4 = vadd.f32 %v3554_v15, %v2752_v28  ;;  %v3557_v42 = vadd.f32 %v3556_v59, %v3555_v7 }
 0x7f4   :  { %v3530_v55 = vpop.f32.mrf.mxu1  ;;  %v4919_v14 = vpop.f32.mrf.mxu0 }
 0x7f5   :  { %v2757_v19 = vadd.f32 %v3529_v23, %v2708_v31 }
 0x7f6   :  { %v3531_v62 = vpop.f32.mrf.mxu1  ;;  %v4921_v11 = vpop.f32.mrf.mxu0 }
 0x7f7   :  { %v3532_v47 = vadd.f32 %v3531_v62, %v3530_v55  ;;  %v2806_v46 = vadd.f32 %v3557_v42, %v2757_v19  ;;  %v3560_v32 = vadd.f32 %v4921_v11, %v4919_v14 }
 0x7f9   :  { %v2760_v3 = vadd.f32 %v3532_v47, %v2711_v21 }
 0x7fb   :  { %v2809_v60 = vadd.f32 %v3560_v32, %v2760_v3 }
 0x809   :  { %v3577_v49 = vpop.f32.mrf.mxu1  ;;  %v3605_v41 = vpop.f32.mrf.mxu0 }
 0x80b   :  { %v3578_v48 = vpop.f32.mrf.mxu1  ;;  %v3606_v54 = vpop.f32.mrf.mxu0 }
 0x80c   :  { %v3579_v2 = vadd.f32 %v3578_v48, %v3577_v49  ;;  %v3607_v37 = vadd.f32 %v3606_v54, %v3605_v41 }
 0x80d   :  { %v3580_v30 = vpop.f32.mrf.mxu1  ;;  %v3608_v56 = vpop.f32.mrf.mxu0 }
 0x80e   :  { %v2847_v9 = vadd.f32 %v3579_v2, %v2798_v13 }
 0x80f   :  { %v3581_v10 = vpop.f32.mrf.mxu1  ;;  %v3609_v53 = vpop.f32.mrf.mxu0 }
 0x810   :  { %v3582_v25 = vadd.f32 %v3581_v10, %v3580_v30  ;;  %v2896_v8 = vadd.f32 %v3607_v37, %v2847_v9  ;;  %v3610_v49 = vadd.f32 %v3609_v53, %v3608_v56 }
 0x811   :  { %v3583_v61 = vpop.f32.mrf.mxu1  ;;  %v3611_v57 = vpop.f32.mrf.mxu0 }
 0x812   :  { %v2850_v20 = vadd.f32 %v3582_v25, %v2801_v4 }
 0x813   :  { %v3584_v43 = vpop.f32.mrf.mxu1  ;;  %v3612_v18 = vpop.f32.mrf.mxu0 }
 0x814   :  { %v3585_v24 = vadd.f32 %v3584_v43, %v3583_v61  ;;  %v2899_v7 = vadd.f32 %v3610_v49, %v2850_v20  ;;  %v3613_v50 = vadd.f32 %v3612_v18, %v3611_v57 }
 0x815   :  { %v3586_v16 = vpop.f32.mrf.mxu1  ;;  %v3614_v1 = vpop.f32.mrf.mxu0 }
 0x816   :  { %v2855_v39 = vadd.f32 %v3585_v24, %v2806_v46 }
 0x817   :  { %v3587_v34 = vpop.f32.mrf.mxu1  ;;  %v3615_v12 = vpop.f32.mrf.mxu0 }
 0x818   :  { %v3588_v59 = vadd.f32 %v3587_v34, %v3586_v16  ;;  %v2904_v53 = vadd.f32 %v3613_v50, %v2855_v39  ;;  %v3616_v17 = vadd.f32 %v3615_v12, %v3614_v1  ;;  %v4993_v12 = vld [vmem:[#allocation8_spill] sm:$0xff] }
 0x81a   :  { %v2858_v6 = vadd.f32 %v3588_v59, %v2809_v60  ;;  %v4948_v60 = vld [vmem:[%s4979_s6 + $0x8] sm:$0xff]  ;;  %s3916_s6 = smov [#allocation2]  }
 0x81b   :  { %s3199_s1 = sshll.u32 %s3916_s6, 4  ;;  %s3200_s1 = int_to_ptr.vmem [resolvable:$true] %s3199_s1 }
 0x81c   :  { %v2907_v13 = vadd.f32 %v3616_v17, %v2858_v6  ;;  %s3892_s24 = scalar_lea.vmem %s3200_s1, 64  ;;  %p3897_p1 = scmp.lt.s32.totalorder %s3200_s1, %s3200_s1 }
 0x81d   :  { %p3893_p0 = scmp.ne.s32.totalorder %s3200_s1, %s3892_s24  ;;  %p3898_p2 = scmp.lt.s32.totalorder %s3892_s24, %s3892_s24 }
 0x81f   :  { %p3899_p3 = por %p3898_p2, %p3897_p1 }
 0x821   :  { %p3900_p4 = pnand %p3899_p3, %p3893_p0 }
 0x82a   :  { %v3633_v44 = vpop.f32.mrf.mxu1  ;;  %v3661_v36 = vpop.f32.mrf.mxu0 }
 0x82c   :  { %v3634_v27 = vpop.f32.mrf.mxu1  ;;  %v3662_v33 = vpop.f32.mrf.mxu0 }
 0x82d   :  { %v3635_v22 = vadd.f32 %v3634_v27, %v3633_v44  ;;  %v3663_v30 = vadd.f32 %v3662_v33, %v3661_v36 }
 0x82e   :  { %v3636_v51 = vpop.f32.mrf.mxu1  ;;  %v3664_v10 = vpop.f32.mrf.mxu0 }
 0x82f   :  { %v2945_v48 = vadd.f32 %v3635_v22, %v2896_v8 }
 0x830   :  { %v3637_v55 = vpop.f32.mrf.mxu1  ;;  %v3665_v54 = vpop.f32.mrf.mxu0 }
 0x831   :  { %v2994_v62 = vadd.f32 %v3663_v30, %v2945_v48  ;;  %v3638_v41 = vadd.f32 %v3637_v55, %v3636_v51  ;;  %v3666_v58 = vadd.f32 %v3665_v54, %v3664_v10 }
 0x832   :  { %v3639_v61 = vpop.f32.mrf.mxu1  ;;  %v3667_v43 = vpop.f32.mrf.mxu0 }
 0x833   :  { %v2948_v0 = vadd.f32 %v3638_v41, %v2899_v7  ;;  %v3008_v56 = vadd.f32 %v2994_v62, %v4190_v38 }
 0x834   :  { %v3640_v45 = vpop.f32.mrf.mxu1  ;;  %v3668_v11 = vpop.f32.mrf.mxu0 }
 0x835   :  { %v2997_v40 = vadd.f32 %v3666_v58, %v2948_v0  ;;  %v3641_v14 = vadd.f32 %v3640_v45, %v3639_v61  ;;  %v3012_v35 = vsel %vm84_vm0, %v3008_v56, 0.0  ;;  %v3669_v57 = vadd.f32 %v3668_v11, %v3667_v43  ;;  %v4994_v0 = vld [vmem:[#allocation9_spill] sm:$0xff]  ;;  %v4995_v58 = vld [vmem:[#allocation10_spill] sm:$0xff] }
 0x836   :  { %v3642_v16 = vpop.f32.mrf.mxu1  ;;  %3013 = vadd.xlane.f32.xlu0 %v3012_v35  ;;  %v3670_v18 = vpop.f32.mrf.mxu0  ;;  %v3067_v43 = vrot.slane %v4995_v58, %v4994_v0  ;;  %v4996_v45 = vld [vmem:[#allocation6_spill] sm:$0xff] }
 0x837   :  { %v2953_v2 = vadd.f32 %v3641_v14, %v2904_v53  ;;  %v3009_v52 = vadd.f32 %v2997_v40, %v4192_v63  ;;  %v3075_v6 = vrot.slane %v4948_v60, %v4996_v45 }
 0x838   :  { %v3643_v23 = vpop.f32.mrf.mxu1  ;;  %v3671_v31 = vpop.f32.mrf.mxu0 }
 0x839   :  { %v3002_v28 = vadd.f32 %v3669_v57, %v2953_v2  ;;  %v3644_v38 = vadd.f32 %v3643_v23, %v3642_v16  ;;  %v3015_v34 = vsel %vm84_vm0, %v3009_v52, 0.0  ;;  %v3672_v15 = vadd.f32 %v3671_v31, %v3670_v18 }
 0x83a   :  { %3016 = vadd.xlane.f32.xlu1 %v3015_v34 }
 0x83b   :  { %v2956_v26 = vadd.f32 %v3644_v38, %v2907_v13  ;;  %v3010_v9 = vadd.f32 %v3002_v28, %v4232_v29 }
 0x83d   :  { %v3005_v25 = vadd.f32 %v3672_v15, %v2956_v26  ;;  %v3018_v1 = vsel %vm84_vm0, %v3010_v9, 0.0 }
 0x83e   :  { %3019 = vadd.xlane.f32.xlu0 %v3018_v1 }
 0x83f   :  { %v3011_v19 = vadd.f32 %v3005_v25, %v4993_v12 }
 0x841   :  { %v3021_v63 = vsel %vm84_vm0, %v3011_v19, 0.0 }
 0x842   :  { %3022 = vadd.xlane.f32.xlu1 %v3021_v63 }
 0x8bf   :  { %v3014_v44 = vpop.xlane.xlu0 %3013 }
 0x8c0   :  { %v3024_v5 = vmul.f32 0.015625, %v3014_v44 }
 0x8c2   :  { %v3028_v4 = vsub.f32 %v3008_v56, %v3024_v5 }
 0x8c3   :  { %v3017_v47 = vpop.xlane.xlu1 %3016 }
 0x8c4   :  { %v3025_v37 = vmul.f32 0.015625, %v3017_v47  ;;  %v3032_v36 = vmul.f32 %v3028_v4, %v3028_v4 }
 0x8c6   :  { %v3029_v42 = vsub.f32 %v3009_v52, %v3025_v37  ;;  %v3036_v24 = vsel %vm84_vm0, %v3032_v36, 0.0 }
 0x8c7   :  { %3037 = vadd.xlane.f32.xlu0 %v3036_v24  ;;  %v3020_v29 = vpop.xlane.xlu0 %3019 }
 0x8c8   :  { %v3026_v27 = vmul.f32 0.015625, %v3020_v29  ;;  %v3033_v21 = vmul.f32 %v3029_v42, %v3029_v42 }
 0x8ca   :  { %v3030_v8 = vsub.f32 %v3010_v9, %v3026_v27  ;;  %v3039_v20 = vsel %vm84_vm0, %v3033_v21, 0.0 }
 0x8cb   :  { %3040 = vadd.xlane.f32.xlu1 %v3039_v20  ;;  %v3023_v22 = vpop.xlane.xlu1 %3022 }
 0x8cc   :  { %v3027_v33 = vmul.f32 0.015625, %v3023_v22  ;;  %v3034_v46 = vmul.f32 %v3030_v8, %v3030_v8 }
 0x8ce   :  { %v3031_v51 = vsub.f32 %v3011_v19, %v3027_v33  ;;  %v3042_v3 = vsel %vm84_vm0, %v3034_v46, 0.0 }
 0x8cf   :  { %3043 = vadd.xlane.f32.xlu0 %v3042_v3 }
 0x8d0   :  { %v3035_v49 = vmul.f32 %v3031_v51, %v3031_v51 }
 0x8d2   :  { %v3045_v48 = vsel %vm84_vm0, %v3035_v49, 0.0 }
 0x8d3   :  { %3046 = vadd.xlane.f32.xlu1 %v3045_v48 }
 0x950   :  { %v3038_v30 = vpop.xlane.xlu0 %3037 }
 0x951   :  { %v3048_v10 = vmul.f32 0.015625, %v3038_v30 }
 0x953   :  { %v3052_v32 = vadd.f32 1e-05, %v3048_v10 }
 0x954   :  { %v3041_v39 = vpop.xlane.xlu1 %3040 }
 0x955   :  { %3874 = vrsqrt.f32 %v3052_v32  ;;  %v3049_v55 = vmul.f32 0.015625, %v3041_v39 }
 0x957   :  { %v3053_v7 = vadd.f32 1e-05, %v3049_v55 }
 0x958   :  { %v3044_v59 = vpop.xlane.xlu0 %3043 }
 0x959   :  { %3876 = vrsqrt.f32 %v3053_v7  ;;  %v3050_v62 = vmul.f32 0.015625, %v3044_v59  ;;  %v4997_v59 = vld [vmem:[#allocation5_spill] sm:$0xff] }
 0x95b   :  { %v3054_v41 = vadd.f32 1e-05, %v3050_v62  ;;  %v3135_v62 = vrot.slane %v4948_v60, %v4997_v59 }
 0x95c   :  { %v3047_v54 = vpop.xlane.xlu1 %3046 }
 0x95d   :  { %3878 = vrsqrt.f32 %v3054_v41  ;;  %v3051_v50 = vmul.f32 0.015625, %v3047_v54  ;;  %v4998_v54 = vld [vmem:[#allocation7_spill] sm:$0xff] }
 0x95f   :  { %v3055_v61 = vadd.f32 1e-05, %v3051_v50  ;;  %v3143_v50 = vrot.slane %v4948_v60, %v4998_v54 }
 0x961   :  { %3880 = vrsqrt.f32 %v3055_v61 }
 0x962   :  { %v3875_v56 = vpop.eup %3874 }
 0x963   :  { %v3060_v53 = vmul.f32 %v3875_v56, %v3028_v4 }
 0x965   :  { %v3068_v40 = vmul.f32 %v3067_v43, %v3060_v53 }
 0x966   :  { %v3877_v14 = vpop.eup %3876 }
 0x967   :  { %v3076_v11 = vadd.f32 %v3075_v6, %v3068_v40  ;;  %v3061_v35 = vmul.f32 %v3877_v14, %v3029_v42 }
 0x969   :  { %v3080_v16 = vsel %vm84_vm0, %v3076_v11, 0.0  ;;  %v3069_v17 = vmul.f32 %v3067_v43, %v3061_v35 }
 0x96a   :  { %v3879_v2 = vpop.eup %3878  ;;  %3081 = vadd.xlane.f32.xlu0 %v3080_v16 }
 0x96b   :  { %v3077_v57 = vadd.f32 %v3075_v6, %v3069_v17  ;;  %v3062_v18 = vmul.f32 %v3879_v2, %v3030_v8 }
 0x96d   :  { %v3083_v52 = vsel %vm84_vm0, %v3077_v57, 0.0  ;;  %v3070_v23 = vmul.f32 %v3067_v43, %v3062_v18 }
 0x96e   :  { %v3881_v13 = vpop.eup %3880  ;;  %3084 = vadd.xlane.f32.xlu1 %v3083_v52 }
 0x96f   :  { %v3078_v28 = vadd.f32 %v3075_v6, %v3070_v23  ;;  %v3063_v38 = vmul.f32 %v3881_v13, %v3031_v51 }
 0x971   :  { %v3086_v31 = vsel %vm84_vm0, %v3078_v28, 0.0  ;;  %v3071_v34 = vmul.f32 %v3067_v43, %v3063_v38 }
 0x972   :  { %3087 = vadd.xlane.f32.xlu0 %v3086_v31 }
 0x973   :  { %v3079_v26 = vadd.f32 %v3075_v6, %v3071_v34 }
 0x975   :  { %v3089_v15 = vsel %vm84_vm0, %v3079_v26, 0.0 }
 0x976   :  { %3090 = vadd.xlane.f32.xlu1 %v3089_v15 }
 0x9f3   :  { %v3082_v9 = vpop.xlane.xlu0 %3081 }
 0x9f4   :  { %v3092_v25 = vmul.f32 0.015625, %v3082_v9 }
 0x9f6   :  { %v3096_v1 = vsub.f32 %v3076_v11, %v3092_v25 }
 0x9f7   :  { %v3085_v12 = vpop.xlane.xlu1 %3084 }
 0x9f8   :  { %v3093_v19 = vmul.f32 0.015625, %v3085_v12  ;;  %v3100_v63 = vmul.f32 %v3096_v1, %v3096_v1 }
 0x9fa   :  { %v3097_v44 = vsub.f32 %v3077_v57, %v3093_v19  ;;  %v3104_v5 = vsel %vm84_vm0, %v3100_v63, 0.0 }
 0x9fb   :  { %3105 = vadd.xlane.f32.xlu0 %v3104_v5  ;;  %v3088_v4 = vpop.xlane.xlu0 %3087 }
 0x9fc   :  { %v3094_v47 = vmul.f32 0.015625, %v3088_v4  ;;  %v3101_v37 = vmul.f32 %v3097_v44, %v3097_v44 }
 0x9fe   :  { %v3098_v36 = vsub.f32 %v3078_v28, %v3094_v47  ;;  %v3107_v42 = vsel %vm84_vm0, %v3101_v37, 0.0 }
 0x9ff   :  { %3108 = vadd.xlane.f32.xlu1 %v3107_v42  ;;  %v3091_v24 = vpop.xlane.xlu1 %3090 }
 0xa00   :  { %v3095_v29 = vmul.f32 0.015625, %v3091_v24  ;;  %v3102_v27 = vmul.f32 %v3098_v36, %v3098_v36 }
 0xa02   :  { %v3099_v21 = vsub.f32 %v3079_v26, %v3095_v29  ;;  %v3110_v8 = vsel %vm84_vm0, %v3102_v27, 0.0 }
 0xa03   :  { %3111 = vadd.xlane.f32.xlu0 %v3110_v8 }
 0xa04   :  { %v3103_v20 = vmul.f32 %v3099_v21, %v3099_v21 }
 0xa06   :  { %v3113_v22 = vsel %vm84_vm0, %v3103_v20, 0.0 }
 0xa07   :  { %3114 = vadd.xlane.f32.xlu1 %v3113_v22 }
 0xa84   :  { %v3106_v33 = vpop.xlane.xlu0 %3105 }
 0xa85   :  { %v3116_v46 = vmul.f32 0.015625, %v3106_v33 }
 0xa87   :  { %v3120_v51 = vadd.f32 1e-05, %v3116_v46 }
 0xa88   :  { %v3109_v3 = vpop.xlane.xlu1 %3108 }
 0xa89   :  { %3882 = vrsqrt.f32 %v3120_v51  ;;  %v3117_v49 = vmul.f32 0.015625, %v3109_v3 }
 0xa8b   :  { %v3121_v48 = vadd.f32 1e-05, %v3117_v49 }
 0xa8c   :  { %v3112_v30 = vpop.xlane.xlu0 %3111 }
 0xa8d   :  { %3884 = vrsqrt.f32 %v3121_v48  ;;  %v3118_v10 = vmul.f32 0.015625, %v3112_v30 }
 0xa8f   :  { %v3122_v32 = vadd.f32 1e-05, %v3118_v10 }
 0xa90   :  { %v3115_v39 = vpop.xlane.xlu1 %3114 }
 0xa91   :  { %3886 = vrsqrt.f32 %v3122_v32  ;;  %v3119_v55 = vmul.f32 0.015625, %v3115_v39 }
 0xa93   :  { %v3123_v7 = vadd.f32 1e-05, %v3119_v55 }
 0xa95   :  { %3888 = vrsqrt.f32 %v3123_v7 }
 0xa96   :  { %v3883_v41 = vpop.eup %3882 }
 0xa97   :  { %v3128_v61 = vmul.f32 %v3883_v41, %v3096_v1 }
 0xa99   :  { %v3136_v0 = vmul.f32 %v3135_v62, %v3128_v61 }
 0xa9a   :  { %v3885_v58 = vpop.eup %3884 }
 0xa9b   :  { %v3129_v43 = vmul.f32 %v3885_v58, %v3097_v44  ;;  %v3144_v56 = vadd.f32 %v3143_v50, %v3136_v0 }
 0xa9d   :  { %v3137_v53 = vmul.f32 %v3135_v62, %v3129_v43  ;;  %v3148_v45 = vsel %vm84_vm0, %v3144_v56, 0.0 }
 0xa9e   :  { %v3887_v6 = vpop.eup %3886  ;;  %v3149_v40 = vrot.slane %v3148_v45, 4 }
 0xa9f   :  { %v3130_v14 = vmul.f32 %v3887_v6, %v3098_v36  ;;  %v3145_v11 = vadd.f32 %v3143_v50, %v3137_v53 }
 0xaa0   :  { %v3150_v35 = vadd.f32 %v3149_v40, %v3148_v45 }
 0xaa1   :  { %v3138_v16 = vmul.f32 %v3135_v62, %v3130_v14  ;;  %v3155_v17 = vsel %vm84_vm0, %v3145_v11, 0.0 }
 0xaa2   :  { %v3889_v2 = vpop.eup %3888  ;;  %v3156_v57 = vrot.slane %v3155_v17, 4  ;;  %v3151_v52 = vrot.slane %v3150_v35, 2 }
 0xaa3   :  { %v3131_v18 = vmul.f32 %v3889_v2, %v3099_v21  ;;  %v3146_v60 = vadd.f32 %v3143_v50, %v3138_v16 }
 0xaa4   :  { %v3157_v23 = vadd.f32 %v3156_v57, %v3155_v17  ;;  %v3152_v26 = vadd.f32 %v3151_v52, %v3150_v35 }
 0xaa5   :  { %v3139_v13 = vmul.f32 %v3135_v62, %v3131_v18  ;;  %v3162_v28 = vsel %vm84_vm0, %v3146_v60, 0.0 }
 0xaa6   :  { %v3158_v38 = vrot.slane %v3157_v23, 2  ;;  %v3163_v31 = vrot.slane %v3162_v28, 4  ;;  %v3153_v63 = vrot.slane %v3152_v26, 1 }
 0xaa7   :  { %v3147_v34 = vadd.f32 %v3143_v50, %v3139_v13 }
 0xaa8   :  { %v3159_v15 = vadd.f32 %v3158_v38, %v3157_v23  ;;  %v3164_v9 = vadd.f32 %v3163_v31, %v3162_v28  ;;  %v3154_v36 = vadd.f32 %v3153_v63, %v3152_v26 }
 0xaa9   :  { %v3169_v25 = vsel %vm84_vm0, %v3147_v34, 0.0 }
 0xaaa   :  { %v3160_v1 = vrot.slane %v3159_v15, 1  ;;  %v3165_v12 = vrot.slane %v3164_v9, 2  ;;  %v3170_v19 = vrot.slane %v3169_v25, 4  ;;  %v3176_v20 = vmul.f32 0.125, %v3154_v36 }
 0xaac   :  { %v3166_v44 = vadd.f32 %v3165_v12, %v3164_v9  ;;  %v3171_v5 = vadd.f32 %v3170_v19, %v3169_v25  ;;  %v3161_v4 = vadd.f32 %v3160_v1, %v3159_v15 }
 0xaae   :  { %v3167_v47 = vrot.slane %v3166_v44, 1  ;;  %v3172_v37 = vrot.slane %v3171_v5, 2  ;;  %v3177_v27 = vmul.f32 0.125, %v3161_v4 }
 0xab0   :  { %v3168_v42 = vadd.f32 %v3167_v47, %v3166_v44  ;;  %v3173_v24 = vadd.f32 %v3172_v37, %v3171_v5  ;;  %v3185_v33 = vsel %vm3184_vm6, %v3177_v27, %v3176_v20 }
 0xab2   :  { %v3174_v29 = vrot.slane %v3173_v24, 1  ;;  %v3178_v21 = vmul.f32 0.125, %v3168_v42 }
 0xab4   :  { %v3175_v8 = vadd.f32 %v3174_v29, %v3173_v24  ;;  %v3187_v46 = vsel %vm3186_vm7, %v3178_v21, %v3185_v33 }
 0xab6   :  { %v3179_v22 = vmul.f32 0.125, %v3175_v8 }
 0xab8   :  { %v3189_v51 = vsel %vm3188_vm8, %v3179_v22, %v3187_v46 }
 0xab9   :  { %3192 = vst.msk [vmem:[#allocation2] sm:$0xf] %vm3191_vm9, %v3189_v51 }
 0xaba   :  { %3903 = shalt.err (!%p3900_p4)
}
 0xabb   :  { %3202 = dma.vmem_to_hbm [thread:$0]  %s3200_s1, 64, %s4980_s7, [#allocation3]  }
 0xabc   :  { %3912 = dma.done.wait [#allocation3], 64  }
 0xabd   :  { %3913 = vsyncadd [#allocation3], 4294967232 }
 0xabe   :  { %3206 = vsyncpa [#allocation3], 1 }

</bundles_post_ra>
